<compile_context>
chip_gen: v7x
topology: tpu7x:2x2x1
jax: 0.10.0
libtpu: 0.0.40
codegen_flags: <defaults>
</compile_context>

<pallas_src>
import math
import functools

import jax
import jax.numpy as jnp
from jax.experimental import pallas as pl
from jax.experimental.pallas import tpu as pltpu


NEG = -1e30                      # finite mask sentinel (avoids -inf -> NaN)
MATMUL_DTYPE = jnp.bfloat16      # MXU operand dtype; set jnp.float32 for parity
ACT_DTYPE = MATMUL_DTYPE         # inter-layer activation dtype in HBM
LN_EPS = 1e-5


# ---------------------------------------------------------------------------
# Small helpers
# ---------------------------------------------------------------------------

def _pick_tile(dim, candidates):
    """Largest candidate tile that divides `dim`, else the full dim."""
    for c in candidates:
        if dim >= c and dim % c == 0:
            return c
    return dim


def _bytes(shape, dtype):
    return int(math.prod(shape)) * jnp.dtype(dtype).itemsize


def _cparams(semantics, block_bytes):
    """CompilerParams with an explicit scoped-VMEM limit derived from blocks."""
    est = int(sum(block_bytes))
    limit = min(max(3 * est, 16 * 1024 * 1024), 48 * 1024 * 1024)
    return pltpu.CompilerParams(dimension_semantics=semantics,
                                vmem_limit_bytes=limit)


# ---------------------------------------------------------------------------
# Pallas kernels
# ---------------------------------------------------------------------------

def _mha_fused_kernel(xq_ref, xkv_ref, kpm_ref,
                      wq_ref, wkv_ref, wo_ref, bcol_ref, ovec_ref,
                      o_ref, *, nheads, causal):
    """One grid step = (batch b, query-row tile).

    Fused: Q/KV projections (transposed domain, head-batched) -> multi-head
    softmax attention -> output projection -> residual add -> LayerNorm.
    """
    f32 = jnp.float32
    xq = xq_ref[0]                              # (Lt, E)  ACT_DTYPE
    xkv = xkv_ref[0]                            # (S,  E)  ACT_DTYPE
    Lt, E = xq.shape
    S = xkv.shape[0]
    H = nheads
    Dh = E // H
    mmdt = wq_ref.dtype
    approx_recip = jnp.dtype(mmdt) != jnp.dtype(jnp.float32)

    # --- projections in the transposed domain: qT[o, l] = sum_i Wq[o,i] xq[l,i]
    # (Wq / bq are pre-scaled by 1/sqrt(Dh) at init; Wkv rows = [K; V]).
    qT = jax.lax.dot_general(wq_ref[...], xq.astype(mmdt),
                             (((1,), (1,)), ((), ())),
                             preferred_element_type=f32)
    qT = qT + bcol_ref[0:E]                     # (E, Lt) + (E, 1)
    kvT = jax.lax.dot_general(wkv_ref[...], xkv.astype(mmdt),
                              (((1,), (1,)), ((), ())),
                              preferred_element_type=f32)
    kvT = kvT + bcol_ref[E:3 * E]               # (2E, S) + (2E, 1)

    # Head-major views via leading-dim reshapes (no lane-dim slicing/concat).
    qh = jnp.swapaxes(qT.reshape(H, Dh, Lt), 1, 2)      # (H, Lt, Dh)
    kT3 = kvT[:E].reshape(H, Dh, S)                     # (H, Dh, S)
    vT3 = kvT[E:].reshape(H, Dh, S)                     # (H, Dh, S)

    # --- additive mask: per-batch key-padding row (+ causal) in-register -----
    mask = jnp.broadcast_to(kpm_ref[0], (Lt, S)).astype(f32)    # (Lt, S)
    if causal:
        row0 = pl.program_id(1) * Lt
        ii = row0 + jax.lax.broadcasted_iota(jnp.int32, (Lt, S), 0)
        jj = jax.lax.broadcasted_iota(jnp.int32, (Lt, S), 1)
        mask = mask + jnp.where(jj > ii, NEG, 0.0).astype(f32)

    # --- head-batched attention (leading-batch einsums, f32 accumulation) ----
    s = jnp.einsum('hld,hds->hls', qh.astype(mmdt), kT3.astype(mmdt),
                   preferred_element_type=f32)
    s = s + mask[None]
    s = s - jnp.max(s, axis=-1, keepdims=True)
    p = jnp.exp(s)
    denom = jnp.sum(p, axis=-1, keepdims=True)
    p = p * pl.reciprocal(denom, approx=approx_recip)

    ctxT = jnp.einsum('hds,hls->hdl', vT3.astype(mmdt), p.astype(mmdt),
                      preferred_element_type=f32)       # (H, Dh, Lt)
    ctx = ctxT.reshape(E, Lt).T                         # (Lt, E), 2D transpose

    # --- output projection + residual + LayerNorm (post-norm, eps=1e-5) ------
    a = jnp.dot(ctx.astype(mmdt), wo_ref[...],
                preferred_element_type=f32) + ovec_ref[0:1]     # + bo
    y = xq.astype(f32) + a
    mu = jnp.mean(y, axis=-1, keepdims=True)
    var = jnp.mean(jnp.square(y - mu), axis=-1, keepdims=True)
    o_ref[0] = ((y - mu) * jax.lax.rsqrt(var + LN_EPS) * ovec_ref[1:2]
                + ovec_ref[2:3]).astype(o_ref.dtype)


def _ffn_ln_kernel(x_ref, w1_ref, b1_ref, w2_ref, vec_ref, o_ref):
    # Fused: linear1 -> ReLU -> linear2 -> +residual -> LayerNorm per row tile.
    f32 = jnp.float32
    x = x_ref[...]                                      # (tm, E)  ACT_DTYPE
    mmdt = w1_ref.dtype
    h = jnp.dot(x.astype(mmdt), w1_ref[...],
                preferred_element_type=f32) + b1_ref[...]
    h = jnp.maximum(h, 0.0)
    f = jnp.dot(h.astype(mmdt), w2_ref[...],
                preferred_element_type=f32) + vec_ref[0:1]      # + b2
    y = x.astype(f32) + f
    mu = jnp.mean(y, axis=-1, keepdims=True)
    var = jnp.mean(jnp.square(y - mu), axis=-1, keepdims=True)
    o_ref[...] = ((y - mu) * jax.lax.rsqrt(var + LN_EPS) * vec_ref[1:2]
                  + vec_ref[2:3]).astype(o_ref.dtype)


def _linear_bias_kernel(x_ref, w_ref, b_ref, o_ref):
    o_ref[...] = (jnp.dot(x_ref[...].astype(w_ref.dtype), w_ref[...],
                          preferred_element_type=jnp.float32) + b_ref[...])


# ---------------------------------------------------------------------------
# Pallas wrappers
# ---------------------------------------------------------------------------

def mha_block(xq, xkv, kpm_add, p, nheads, causal):
    """Fused attention sub-layer.

    xq: (N, L, E) query / residual input; xkv: (N, S, E) key/value input;
    kpm_add: (N, 1, S) additive key-padding mask (0 or NEG), f32.
    """
    N, L, E = xq.shape
    S = xkv.shape[1]
    assert E % nheads == 0 and (E // nheads) % 8 == 0, (E, nheads)
    Lt = _pick_tile(L, (256, 128))
    kernel = functools.partial(_mha_fused_kernel, nheads=nheads, causal=causal)
    block_bytes = [
        2 * _bytes((1, Lt, E), xq.dtype), 2 * _bytes((1, S, E), xkv.dtype),
        2 * _bytes((1, 1, S), jnp.float32),
        2 * _bytes((E, E), p['wq'].dtype), 2 * _bytes((2 * E, E), p['wkv'].dtype),
        2 * _bytes((E, E), p['wo'].dtype), 2 * _bytes((3 * E, 1), jnp.float32),
        2 * _bytes((3, E), jnp.float32), 2 * _bytes((1, Lt, E), ACT_DTYPE),
        4 * _bytes((nheads, Lt, S), jnp.float32),       # in-kernel scores/probs
    ]
    return pl.pallas_call(
        kernel,
        out_shape=jax.ShapeDtypeStruct((N, L, E), ACT_DTYPE),
        grid=(N, L // Lt),
        in_specs=[
            pl.BlockSpec((1, Lt, E), lambda b, lt: (b, lt, 0)),   # xq / residual
            pl.BlockSpec((1, S, E), lambda b, lt: (b, 0, 0)),     # xkv
            pl.BlockSpec((1, 1, S), lambda b, lt: (b, 0, 0)),     # key-pad row
            pl.BlockSpec((E, E), lambda b, lt: (0, 0)),           # Wq (out,in)
            pl.BlockSpec((2 * E, E), lambda b, lt: (0, 0)),       # Wkv (out,in)
            pl.BlockSpec((E, E), lambda b, lt: (0, 0)),           # Wo (in,out)
            pl.BlockSpec((3 * E, 1), lambda b, lt: (0, 0)),       # [bq;bk;bv]
            pl.BlockSpec((3, E), lambda b, lt: (0, 0)),           # [bo;gamma;beta]
        ],
        out_specs=pl.BlockSpec((1, Lt, E), lambda b, lt: (b, lt, 0)),
        compiler_params=_cparams(("parallel", "parallel"), block_bytes),
    )(xq, xkv, kpm_add, p['wq'], p['wkv'], p['wo'], p['bcol'], p['ovec'])


def ffn_ln(x, p):
    """Fused FFN + residual + LayerNorm. x: (N, L, E)."""
    N, L, E = x.shape
    M = N * L
    F = p['w1'].shape[1]
    tm = _pick_tile(M, (512, 256, 128))        # sweep per chip (256 on v7x)
    block_bytes = [
        2 * _bytes((tm, E), x.dtype), 2 * _bytes((E, F), p['w1'].dtype),
        2 * _bytes((1, F), jnp.float32), 2 * _bytes((F, E), p['w2'].dtype),
        2 * _bytes((3, E), jnp.float32), 2 * _bytes((tm, E), ACT_DTYPE),
        2 * _bytes((tm, F), jnp.float32),       # ReLU intermediate
    ]
    out = pl.pallas_call(
        _ffn_ln_kernel,
        out_shape=jax.ShapeDtypeStruct((M, E), ACT_DTYPE),
        grid=(M // tm,),
        in_specs=[pl.BlockSpec((tm, E), lambda i: (i, 0)),
                  pl.BlockSpec((E, F), lambda i: (0, 0)),
                  pl.BlockSpec((1, F), lambda i: (0, 0)),
                  pl.BlockSpec((F, E), lambda i: (0, 0)),
                  pl.BlockSpec((3, E), lambda i: (0, 0))],
        out_specs=pl.BlockSpec((tm, E), lambda i: (i, 0)),
        compiler_params=_cparams(("parallel",), block_bytes),
    )(x.reshape(M, E), p['w1'], p['b1'], p['w2'], p['vec'])
    return out.reshape(N, L, E)


def linear2d(x2, w, b):
    """Final vocab projection. x2: (M, E), w: (E, V) (in,out), b: (1, V)."""
    M, E = x2.shape
    V = w.shape[1]
    tm = _pick_tile(M, (512, 256, 128))
    tn = _pick_tile(V, (512, 256, 128))
    block_bytes = [
        2 * _bytes((tm, E), x2.dtype), 2 * _bytes((E, tn), w.dtype),
        2 * _bytes((1, tn), jnp.float32), 2 * _bytes((tm, tn), jnp.float32),
    ]
    return pl.pallas_call(
        _linear_bias_kernel,
        out_shape=jax.ShapeDtypeStruct((M, V), jnp.float32),
        grid=(M // tm, V // tn),
        in_specs=[pl.BlockSpec((tm, E), lambda i, j: (i, 0)),
                  pl.BlockSpec((E, tn), lambda i, j: (0, j)),
                  pl.BlockSpec((1, tn), lambda i, j: (0, j))],
        out_specs=pl.BlockSpec((tm, tn), lambda i, j: (i, j)),
        compiler_params=_cparams(("parallel", "parallel"), block_bytes),
    )(x2, w, b)


# ---------------------------------------------------------------------------
# Model glue (plain JAX around the fused kernels)
# ---------------------------------------------------------------------------

def encoder_layer(x, p, nheads, src_kpm):
    x = mha_block(x, x, src_kpm, p['attn'], nheads, causal=False)
    x = ffn_ln(x, p['ffn'])
    return x


def decoder_layer(x, memory, p, nheads, trg_kpm, mem_kpm):
    x = mha_block(x, x, trg_kpm, p['self_attn'], nheads, causal=True)
    x = mha_block(x, memory, mem_kpm, p['cross_attn'], nheads, causal=False)
    x = ffn_ln(x, p['ffn'])
    return x


def make_pe_table(max_len, d_model):
    position = jnp.arange(max_len, dtype=jnp.float32)[:, None]
    div_term = jnp.exp(jnp.arange(0, d_model, 2, dtype=jnp.float32)
                       * (-math.log(10000.0) / d_model))
    pe = jnp.zeros((max_len, d_model), jnp.float32)
    pe = pe.at[:, 0::2].set(jnp.sin(position * div_term))
    pe = pe.at[:, 1::2].set(jnp.cos(position * div_term))
    return pe


def forward(params, src, trg, *, nheads, in_pad_idx, out_pad_idx):
    S, N = src.shape
    T = trg.shape[0]
    f32 = jnp.float32

    # Additive key-padding masks (tiny, built once in glue).
    src_kpm = jnp.where(src.T == in_pad_idx, NEG, 0.0).astype(f32).reshape(N, 1, S)
    trg_kpm = jnp.where(trg.T == out_pad_idx, NEG, 0.0).astype(f32).reshape(N, 1, T)

    # Embedding gather + learned-scale positional encoding (fused by XLA),
    # cast to the bf16 activation dtype for the HBM round trips.
    pe = params['pe']
    src_e = (jnp.take(params['enc_emb'], src.T, axis=0)
             + params['pe_scale_enc'][0] * pe[:S][None]).astype(ACT_DTYPE)
    trg_e = (jnp.take(params['dec_emb'], trg.T, axis=0)
             + params['pe_scale_dec'][0] * pe[:T][None]).astype(ACT_DTYPE)

    memory = src_e
    for lp in params['enc_layers']:
        memory = encoder_layer(memory, lp, nheads, src_kpm)

    out = trg_e
    for lp in params['dec_layers']:
        out = decoder_layer(out, memory, lp, nheads, trg_kpm, src_kpm)

    E = out.shape[-1]
    logits = linear2d(out.reshape(N * T, E), params['fc_w'], params['fc_b'])
    V = logits.shape[-1]
    return logits.reshape(N, T, V).transpose(1, 0, 2)      # (T, N, V)


# ---------------------------------------------------------------------------
# Deterministic synthetic parameters (pre-laid-out / pre-scaled / packed)
# ---------------------------------------------------------------------------

def init_params(key, intoken, outtoken, hidden, ff, enc_layers, dec_layers,
                nheads):
    keys = iter(jax.random.split(key, 512))
    wdt = MATMUL_DTYPE
    qscale = 1.0 / math.sqrt(hidden // nheads)

    def nrm(shape, s=0.02):
        return (s * jax.random.normal(next(keys), shape)).astype(jnp.float32)

    def attn_ln_p():
        # Wq/Wkv in PyTorch (out,in) layout (consumed via trans_b matmuls);
        # Wo in (in,out); q-scale folded into Wq/bq; biases + LN params packed.
        return dict(
            wq=(qscale * nrm((hidden, hidden))).astype(wdt),
            wkv=nrm((2 * hidden, hidden)).astype(wdt),          # rows: [K; V]
            wo=nrm((hidden, hidden)).astype(wdt),
            bcol=jnp.concatenate([qscale * nrm((hidden, 1)),    # bq (pre-scaled)
                                  nrm((hidden, 1)),             # bk
                                  nrm((hidden, 1))], axis=0),   # bv
            ovec=jnp.concatenate([nrm((1, hidden)),                       # bo
                                  jnp.ones((1, hidden), jnp.float32),     # gamma
                                  jnp.zeros((1, hidden), jnp.float32)],   # beta
                                 axis=0),
        )

    def ffn_ln_p():
        return dict(
            w1=nrm((hidden, ff)).astype(wdt),                   # (in,out)
            b1=nrm((1, ff)),
            w2=nrm((ff, hidden)).astype(wdt),                   # (in,out)
            vec=jnp.concatenate([nrm((1, hidden)),                        # b2
                                 jnp.ones((1, hidden), jnp.float32),      # gamma
                                 jnp.zeros((1, hidden), jnp.float32)],    # beta
                                axis=0),
        )

    def enc_layer_p():
        return dict(attn=attn_ln_p(), ffn=ffn_ln_p())

    def dec_layer_p():
        return dict(self_attn=attn_ln_p(), cross_attn=attn_ln_p(),
                    ffn=ffn_ln_p())

    return dict(
        enc_emb=nrm((intoken, hidden), s=1.0),      # nn.Embedding ~ N(0, 1)
        dec_emb=nrm((outtoken, hidden), s=1.0),
        pe=make_pe_table(5000, hidden),
        pe_scale_enc=jnp.ones((1,), jnp.float32),
        pe_scale_dec=jnp.ones((1,), jnp.float32),
        enc_layers=[enc_layer_p() for _ in range(enc_layers)],
        dec_layers=[dec_layer_p() for _ in range(dec_layers)],
        fc_w=nrm((hidden, outtoken)).astype(wdt),   # (in,out)
        fc_b=nrm((1, outtoken)),
    )


# ---------------------------------------------------------------------------

if __name__ == "__main__":
    INTOKEN, OUTTOKEN = 16, 16
    HIDDEN, NHEADS, FF = 32, 2, 64
    ENC_LAYERS, DEC_LAYERS = 2, 2
    S, T, N = 8, 8, 2              # src seq, trg seq, batch
    PAD = 0

    key = jax.random.PRNGKey(0)
    pkey, skey, tkey = jax.random.split(key, 3)

    params = init_params(pkey, INTOKEN, OUTTOKEN, HIDDEN, FF,
                         ENC_LAYERS, DEC_LAYERS, NHEADS)

    src = jax.random.randint(skey, (S, N), 1, INTOKEN).astype(jnp.int32)
    trg = jax.random.randint(tkey, (T, N), 1, OUTTOKEN).astype(jnp.int32)
    # Padding at the tail so key-padding masks are exercised.
    src = src.at[-2:, :].set(PAD)
    trg = trg.at[-1:, :].set(PAD)

    fwd = jax.jit(functools.partial(forward, nheads=NHEADS,
                                    in_pad_idx=PAD, out_pad_idx=PAD))
    out = jax.block_until_ready(fwd(params, src, trg))

    assert out.shape == (T, N, OUTTOKEN), out.shape
    assert bool(jnp.all(jnp.isfinite(out.astype(jnp.float32))))
    print("KERNEL_OK")
</pallas_src>

<mosaic_0001>
module attributes {stable_mosaic.version = 11 : i64} {
  func.func @_mha_fused_kernel(%arg0: i32, %arg1: i32, %arg2: memref<1x8x32xbf16, #tpu.memory_space<vmem>>, %arg3: memref<1x8x32xbf16, #tpu.memory_space<vmem>>, %arg4: memref<1x1x8xf32, #tpu.memory_space<vmem>>, %arg5: memref<32x32xbf16, #tpu.memory_space<vmem>>, %arg6: memref<64x32xbf16, #tpu.memory_space<vmem>>, %arg7: memref<32x32xbf16, #tpu.memory_space<vmem>>, %arg8: memref<96x1xf32, #tpu.memory_space<vmem>>, %arg9: memref<3x32xf32, #tpu.memory_space<vmem>>, %arg10: memref<1x8x32xbf16, #tpu.memory_space<vmem>>) attributes {dimension_semantics = [#tpu.dimension_semantics<parallel>, #tpu.dimension_semantics<parallel>], iteration_bounds = array<i64: 2, 1>, scalar_prefetch = 0 : i64, scratch_operands = 0 : i64, tpu.core_type = #tpu.core_type<tc>, window_params = [{transform_indices = @transform_0, window_bounds = array<i64: 1, 8, 32>}, {transform_indices = @transform_1, window_bounds = array<i64: 1, 8, 32>}, {transform_indices = @transform_2, window_bounds = array<i64: 1, 1, 8>}, {pipeline_mode = #tpu.pipeline_mode<synchronous>, transform_indices = @transform_3, window_bounds = array<i64: 32, 32>}, {pipeline_mode = #tpu.pipeline_mode<synchronous>, transform_indices = @transform_4, window_bounds = array<i64: 64, 32>}, {pipeline_mode = #tpu.pipeline_mode<synchronous>, transform_indices = @transform_5, window_bounds = array<i64: 32, 32>}, {pipeline_mode = #tpu.pipeline_mode<synchronous>, transform_indices = @transform_6, window_bounds = array<i64: 96, 1>}, {pipeline_mode = #tpu.pipeline_mode<synchronous>, transform_indices = @transform_7, window_bounds = array<i64: 3, 32>}, {transform_indices = @transform_8, window_bounds = array<i64: 1, 8, 32>}]} {
    %c0 = arith.constant 0 : index
    %c0_0 = arith.constant 0 : index
    %c0_1 = arith.constant 0 : index
    %0 = vector.load %arg2[%c0, %c0_0, %c0_1] : memref<1x8x32xbf16, #tpu.memory_space<vmem>>, vector<1x8x32xbf16>
    %1 = vector.shape_cast %0 : vector<1x8x32xbf16> to vector<8x32xbf16>
    %c0_2 = arith.constant 0 : index
    %c0_3 = arith.constant 0 : index
    %c0_4 = arith.constant 0 : index
    %2 = vector.load %arg3[%c0_2, %c0_3, %c0_4] : memref<1x8x32xbf16, #tpu.memory_space<vmem>>, vector<1x8x32xbf16>
    %3 = vector.shape_cast %2 : vector<1x8x32xbf16> to vector<8x32xbf16>
    %c0_5 = arith.constant 0 : index
    %c0_6 = arith.constant 0 : index
    %4 = vector.load %arg5[%c0_5, %c0_6] : memref<32x32xbf16, #tpu.memory_space<vmem>>, vector<32x32xbf16>
    %cst = arith.constant dense<0.000000e+00> : vector<32x8xf32>
    %5 = tpu.matmul %4, %1, %cst {dimension_numbers = #tpu.dot_dimension_numbers<[1], [1], [0], [0], [0, 0, 1, 0], [], []>} : vector<32x32xbf16>, vector<8x32xbf16>, vector<32x8xf32> -> vector<32x8xf32>
    %c0_7 = arith.constant 0 : index
    %c0_8 = arith.constant 0 : index
    %6 = vector.load %arg8[%c0_7, %c0_8] : memref<96x1xf32, #tpu.memory_space<vmem>>, vector<32x1xf32>
    %7 = vector.broadcast %6 : vector<32x1xf32> to vector<32x8xf32>
    %8 = arith.addf %5, %7 : vector<32x8xf32>
    %c0_9 = arith.constant 0 : index
    %c0_10 = arith.constant 0 : index
    %9 = vector.load %arg6[%c0_9, %c0_10] : memref<64x32xbf16, #tpu.memory_space<vmem>>, vector<64x32xbf16>
    %cst_11 = arith.constant dense<0.000000e+00> : vector<64x8xf32>
    %10 = tpu.matmul %9, %3, %cst_11 {dimension_numbers = #tpu.dot_dimension_numbers<[1], [1], [0], [0], [0, 0, 1, 0], [], []>} : vector<64x32xbf16>, vector<8x32xbf16>, vector<64x8xf32> -> vector<64x8xf32>
    %c32 = arith.constant 32 : index
    %c0_12 = arith.constant 0 : index
    %11 = vector.load %arg8[%c32, %c0_12] : memref<96x1xf32, #tpu.memory_space<vmem>>, vector<64x1xf32>
    %12 = vector.broadcast %11 : vector<64x1xf32> to vector<64x8xf32>
    %13 = arith.addf %10, %12 : vector<64x8xf32>
    %14 = vector.shape_cast %8 : vector<32x8xf32> to vector<2x16x8xf32>
    %15 = tpu.transpose %14, [0, 2, 1] : vector<2x16x8xf32> -> vector<2x8x16xf32>
    %16 = vector.extract_strided_slice %13 {offsets = [0, 0], sizes = [32, 8], strides = [1, 1]} : vector<64x8xf32> to vector<32x8xf32>
    %17 = vector.shape_cast %16 : vector<32x8xf32> to vector<2x16x8xf32>
    %18 = vector.extract_strided_slice %13 {offsets = [32, 0], sizes = [32, 8], strides = [1, 1]} : vector<64x8xf32> to vector<32x8xf32>
    %19 = vector.shape_cast %18 : vector<32x8xf32> to vector<2x16x8xf32>
    %c0_13 = arith.constant 0 : index
    %c0_14 = arith.constant 0 : index
    %c0_15 = arith.constant 0 : index
    %20 = vector.load %arg4[%c0_13, %c0_14, %c0_15] : memref<1x1x8xf32, #tpu.memory_space<vmem>>, vector<1x1x8xf32>
    %21 = vector.shape_cast %20 : vector<1x1x8xf32> to vector<1x8xf32>
    %22 = vector.shape_cast %21 : vector<1x8xf32> to vector<1x8xf32>
    %23 = vector.broadcast %22 : vector<1x8xf32> to vector<8x8xf32>
    %c8_i32 = arith.constant 8 : i32
    %24 = arith.muli %arg1, %c8_i32 : i32
    %25 = tpu.iota {dimensions = array<i32: 0>} : vector<8x8xi32>
    %26 = vector.broadcast %24 : i32 to vector<8x8xi32>
    %27 = arith.addi %26, %25 : vector<8x8xi32>
    %28 = tpu.iota {dimensions = array<i32: 1>} : vector<8x8xi32>
    %29 = arith.cmpi sgt, %28, %27 : vector<8x8xi32>
    %cst_16 = arith.constant -1.000000e+30 : f32
    %cst_17 = arith.constant 0.000000e+00 : f32
    %30 = vector.broadcast %cst_16 : f32 to vector<8x8xf32>
    %31 = vector.broadcast %cst_17 : f32 to vector<8x8xf32>
    %32 = arith.select %29, %30, %31 : vector<8x8xi1>, vector<8x8xf32>
    %33 = arith.addf %23, %32 : vector<8x8xf32>
    %34 = arith.truncf %15 : vector<2x8x16xf32> to vector<2x8x16xbf16>
    %35 = arith.truncf %17 : vector<2x16x8xf32> to vector<2x16x8xbf16>
    "tpu.trace_start"() <{level = 10 : i32, message = "hld,hds->hls"}> : () -> ()
    %cst_18 = arith.constant dense<0.000000e+00> : vector<2x8x8xf32>
    %36 = tpu.matmul %34, %35, %cst_18 {dimension_numbers = #tpu.dot_dimension_numbers<[2], [1], [1], [2], [0, 0, 0, 1, 1, 2], [0], [0]>} : vector<2x8x16xbf16>, vector<2x16x8xbf16>, vector<2x8x8xf32> -> vector<2x8x8xf32>
    "tpu.trace_stop"() : () -> ()
    %37 = vector.shape_cast %33 : vector<8x8xf32> to vector<1x8x8xf32>
    %38 = vector.broadcast %37 : vector<1x8x8xf32> to vector<2x8x8xf32>
    %39 = arith.addf %36, %38 : vector<2x8x8xf32>
    %cst_19 = arith.constant dense<0xFF800000> : vector<2x8xf32>
    %40 = vector.multi_reduction <maximumf>, %39, %cst_19 [2] : vector<2x8x8xf32> to vector<2x8xf32>
    %41 = vector.shape_cast %40 : vector<2x8xf32> to vector<2x8x1xf32>
    %42 = vector.broadcast %41 : vector<2x8x1xf32> to vector<2x8x8xf32>
    %43 = arith.subf %39, %42 : vector<2x8x8xf32>
    %44 = math.exp %43 : vector<2x8x8xf32>
    %cst_20 = arith.constant dense<0.000000e+00> : vector<2x8xf32>
    %45 = vector.multi_reduction <add>, %44, %cst_20 [2] : vector<2x8x8xf32> to vector<2x8xf32>
    %46 = vector.shape_cast %45 : vector<2x8xf32> to vector<2x8x1xf32>
    %47 = tpu.reciprocal %46 {approx = true} : vector<2x8x1xf32> -> vector<2x8x1xf32>
    %48 = vector.broadcast %47 : vector<2x8x1xf32> to vector<2x8x8xf32>
    %49 = arith.mulf %44, %48 : vector<2x8x8xf32>
    %50 = arith.truncf %19 : vector<2x16x8xf32> to vector<2x16x8xbf16>
    %51 = arith.truncf %49 : vector<2x8x8xf32> to vector<2x8x8xbf16>
    "tpu.trace_start"() <{level = 10 : i32, message = "hds,hls->hdl"}> : () -> ()
    %cst_21 = arith.constant dense<0.000000e+00> : vector<2x16x8xf32>
    %52 = tpu.matmul %50, %51, %cst_21 {dimension_numbers = #tpu.dot_dimension_numbers<[2], [2], [1], [1], [0, 0, 0, 1, 1, 1], [0], [0]>} : vector<2x16x8xbf16>, vector<2x8x8xbf16>, vector<2x16x8xf32> -> vector<2x16x8xf32>
    "tpu.trace_stop"() : () -> ()
    %53 = vector.shape_cast %52 : vector<2x16x8xf32> to vector<32x8xf32>
    %54 = tpu.transpose %53, [1, 0] : vector<32x8xf32> -> vector<8x32xf32>
    %55 = arith.truncf %54 : vector<8x32xf32> to vector<8x32xbf16>
    %c0_22 = arith.constant 0 : index
    %c0_23 = arith.constant 0 : index
    %56 = vector.load %arg7[%c0_22, %c0_23] : memref<32x32xbf16, #tpu.memory_space<vmem>>, vector<32x32xbf16>
    %cst_24 = arith.constant dense<0.000000e+00> : vector<8x32xf32>
    %57 = tpu.matmul %55, %56, %cst_24 {dimension_numbers = #tpu.dot_dimension_numbers<[1], [0], [0], [1], [0, 0, 1, 1], [], []>} : vector<8x32xbf16>, vector<32x32xbf16>, vector<8x32xf32> -> vector<8x32xf32>
    %c0_25 = arith.constant 0 : index
    %c0_26 = arith.constant 0 : index
    %58 = vector.load %arg9[%c0_25, %c0_26] : memref<3x32xf32, #tpu.memory_space<vmem>>, vector<1x32xf32>
    %59 = vector.broadcast %58 : vector<1x32xf32> to vector<8x32xf32>
    %60 = arith.addf %57, %59 : vector<8x32xf32>
    %61 = arith.extf %1 : vector<8x32xbf16> to vector<8x32xf32>
    %62 = arith.addf %61, %60 : vector<8x32xf32>
    %cst_27 = arith.constant dense<0.000000e+00> : vector<8xf32>
    %63 = vector.multi_reduction <add>, %62, %cst_27 [1] : vector<8x32xf32> to vector<8xf32>
    %64 = vector.shape_cast %63 : vector<8xf32> to vector<8x1xf32>
    %cst_28 = arith.constant 3.200000e+01 : f32
    %65 = vector.broadcast %cst_28 : f32 to vector<8x1xf32>
    %66 = arith.divf %64, %65 : vector<8x1xf32>
    %67 = vector.broadcast %66 : vector<8x1xf32> to vector<8x32xf32>
    %68 = arith.subf %62, %67 : vector<8x32xf32>
    %69 = arith.mulf %68, %68 : vector<8x32xf32>
    %cst_29 = arith.constant dense<0.000000e+00> : vector<8xf32>
    %70 = vector.multi_reduction <add>, %69, %cst_29 [1] : vector<8x32xf32> to vector<8xf32>
    %71 = vector.shape_cast %70 : vector<8xf32> to vector<8x1xf32>
    %cst_30 = arith.constant 3.200000e+01 : f32
    %72 = vector.broadcast %cst_30 : f32 to vector<8x1xf32>
    %73 = arith.divf %71, %72 : vector<8x1xf32>
    %74 = vector.broadcast %66 : vector<8x1xf32> to vector<8x32xf32>
    %75 = arith.subf %62, %74 : vector<8x32xf32>
    %cst_31 = arith.constant 9.99999974E-6 : f32
    %76 = vector.broadcast %cst_31 : f32 to vector<8x1xf32>
    %77 = arith.addf %73, %76 : vector<8x1xf32>
    %78 = math.rsqrt %77 : vector<8x1xf32>
    %79 = vector.broadcast %78 : vector<8x1xf32> to vector<8x32xf32>
    %80 = arith.mulf %75, %79 : vector<8x32xf32>
    %c1 = arith.constant 1 : index
    %c0_32 = arith.constant 0 : index
    %81 = vector.load %arg9[%c1, %c0_32] : memref<3x32xf32, #tpu.memory_space<vmem>>, vector<1x32xf32>
    %82 = vector.broadcast %81 : vector<1x32xf32> to vector<8x32xf32>
    %83 = arith.mulf %80, %82 : vector<8x32xf32>
    %c2 = arith.constant 2 : index
    %c0_33 = arith.constant 0 : index
    %84 = vector.load %arg9[%c2, %c0_33] : memref<3x32xf32, #tpu.memory_space<vmem>>, vector<1x32xf32>
    %85 = vector.broadcast %84 : vector<1x32xf32> to vector<8x32xf32>
    %86 = arith.addf %83, %85 : vector<8x32xf32>
    %87 = arith.truncf %86 : vector<8x32xf32> to vector<8x32xbf16>
    %c0_34 = arith.constant 0 : index
    %c0_35 = arith.constant 0 : index
    %c0_36 = arith.constant 0 : index
    %88 = vector.load %arg10[%c0_34, %c0_35, %c0_36] : memref<1x8x32xbf16, #tpu.memory_space<vmem>>, vector<1x8x32xbf16>
    %89 = vector.shape_cast %88 : vector<1x8x32xbf16> to vector<8x32xbf16>
    %90 = vector.shape_cast %87 : vector<8x32xbf16> to vector<1x8x32xbf16>
    tpu.vector_store %arg10[%c0_34, %c0_35, %c0_36], %90 {strides = array<i32>} : memref<1x8x32xbf16, #tpu.memory_space<vmem>>, vector<1x8x32xbf16>,
    return
  }
  func.func @transform_0(%arg0: i32, %arg1: i32) -> (i32, i32, i32) {
    %c0_i32 = arith.constant 0 : i32
    %c0_i32_0 = arith.constant 0 : i32
    return %arg0, %arg1, %c0_i32 : i32, i32, i32
  }
  func.func @transform_1(%arg0: i32, %arg1: i32) -> (i32, i32, i32) {
    %c0_i32 = arith.constant 0 : i32
    %c0_i32_0 = arith.constant 0 : i32
    %c0_i32_1 = arith.constant 0 : i32
    return %arg0, %c0_i32, %c0_i32_0 : i32, i32, i32
  }
  func.func @transform_2(%arg0: i32, %arg1: i32) -> (i32, i32, i32) {
    %c0_i32 = arith.constant 0 : i32
    %c0_i32_0 = arith.constant 0 : i32
    %c0_i32_1 = arith.constant 0 : i32
    return %arg0, %c0_i32, %c0_i32_0 : i32, i32, i32
  }
  func.func @transform_3(%arg0: i32, %arg1: i32) -> (i32, i32) {
    %c0_i32 = arith.constant 0 : i32
    %c0_i32_0 = arith.constant 0 : i32
    %c0_i32_1 = arith.constant 0 : i32
    return %c0_i32, %c0_i32_0 : i32, i32
  }
  func.func @transform_4(%arg0: i32, %arg1: i32) -> (i32, i32) {
    %c0_i32 = arith.constant 0 : i32
    %c0_i32_0 = arith.constant 0 : i32
    %c0_i32_1 = arith.constant 0 : i32
    return %c0_i32, %c0_i32_0 : i32, i32
  }
  func.func @transform_5(%arg0: i32, %arg1: i32) -> (i32, i32) {
    %c0_i32 = arith.constant 0 : i32
    %c0_i32_0 = arith.constant 0 : i32
    %c0_i32_1 = arith.constant 0 : i32
    return %c0_i32, %c0_i32_0 : i32, i32
  }
  func.func @transform_6(%arg0: i32, %arg1: i32) -> (i32, i32) {
    %c0_i32 = arith.constant 0 : i32
    %c0_i32_0 = arith.constant 0 : i32
    %c0_i32_1 = arith.constant 0 : i32
    return %c0_i32, %c0_i32_0 : i32, i32
  }
  func.func @transform_7(%arg0: i32, %arg1: i32) -> (i32, i32) {
    %c0_i32 = arith.constant 0 : i32
    %c0_i32_0 = arith.constant 0 : i32
    %c0_i32_1 = arith.constant 0 : i32
    return %c0_i32, %c0_i32_0 : i32, i32
  }
  func.func @transform_8(%arg0: i32, %arg1: i32) -> (i32, i32, i32) {
    %c0_i32 = arith.constant 0 : i32
    %c0_i32_0 = arith.constant 0 : i32
    return %arg0, %arg1, %c0_i32 : i32, i32, i32
  }
}

module attributes {stable_mosaic.version = 11 : i64} {
  func.func @_linear_bias_kernel(%arg0: i32, %arg1: i32, %arg2: memref<16x32xbf16, #tpu.memory_space<vmem>>, %arg3: memref<32x16xbf16, #tpu.memory_space<vmem>>, %arg4: memref<1x16xf32, #tpu.memory_space<vmem>>, %arg5: memref<16x16xf32, #tpu.memory_space<vmem>>) attributes {dimension_semantics = [#tpu.dimension_semantics<parallel>, #tpu.dimension_semantics<parallel>], iteration_bounds = array<i64: 1, 1>, scalar_prefetch = 0 : i64, scratch_operands = 0 : i64, tpu.core_type = #tpu.core_type<tc>, window_params = [{transform_indices = @transform_0, window_bounds = array<i64: 16, 32>}, {transform_indices = @transform_1, window_bounds = array<i64: 32, 16>}, {transform_indices = @transform_2, window_bounds = array<i64: 1, 16>}, {transform_indices = @transform_3, window_bounds = array<i64: 16, 16>}]} {
    %c0 = arith.constant 0 : index
    %c0_0 = arith.constant 0 : index
    %0 = vector.load %arg2[%c0, %c0_0] : memref<16x32xbf16, #tpu.memory_space<vmem>>, vector<16x32xbf16>
    %c0_1 = arith.constant 0 : index
    %c0_2 = arith.constant 0 : index
    %1 = vector.load %arg3[%c0_1, %c0_2] : memref<32x16xbf16, #tpu.memory_space<vmem>>, vector<32x16xbf16>
    %cst = arith.constant dense<0.000000e+00> : vector<16x16xf32>
    %2 = tpu.matmul %0, %1, %cst {dimension_numbers = #tpu.dot_dimension_numbers<[1], [0], [0], [1], [0, 0, 1, 1], [], []>} : vector<16x32xbf16>, vector<32x16xbf16>, vector<16x16xf32> -> vector<16x16xf32>
    %c0_3 = arith.constant 0 : index
    %c0_4 = arith.constant 0 : index
    %3 = vector.load %arg4[%c0_3, %c0_4] : memref<1x16xf32, #tpu.memory_space<vmem>>, vector<1x16xf32>
    %4 = vector.broadcast %3 : vector<1x16xf32> to vector<16x16xf32>
    %5 = arith.addf %2, %4 : vector<16x16xf32>
    %c0_5 = arith.constant 0 : index
    %c0_6 = arith.constant 0 : index
    %6 = vector.load %arg5[%c0_5, %c0_6] : memref<16x16xf32, #tpu.memory_space<vmem>>, vector<16x16xf32>
    tpu.vector_store %arg5[%c0_5, %c0_6], %5 {strides = array<i32>} : memref<16x16xf32, #tpu.memory_space<vmem>>, vector<16x16xf32>,
    return
  }
  func.func @transform_0(%arg0: i32, %arg1: i32) -> (i32, i32) {
    %c0_i32 = arith.constant 0 : i32
    %c0_i32_0 = arith.constant 0 : i32
    return %arg0, %c0_i32 : i32, i32
  }
  func.func @transform_1(%arg0: i32, %arg1: i32) -> (i32, i32) {
    %c0_i32 = arith.constant 0 : i32
    %c0_i32_0 = arith.constant 0 : i32
    return %c0_i32, %arg1 : i32, i32
  }
  func.func @transform_2(%arg0: i32, %arg1: i32) -> (i32, i32) {
    %c0_i32 = arith.constant 0 : i32
    %c0_i32_0 = arith.constant 0 : i32
    return %c0_i32, %arg1 : i32, i32
  }
  func.func @transform_3(%arg0: i32, %arg1: i32) -> (i32, i32) {
    %c0_i32 = arith.constant 0 : i32
    return %arg0, %arg1 : i32, i32
  }
}

module attributes {stable_mosaic.version = 11 : i64} {
  func.func @_ffn_ln_kernel(%arg0: i32, %arg1: memref<16x32xbf16, #tpu.memory_space<vmem>>, %arg2: memref<32x64xbf16, #tpu.memory_space<vmem>>, %arg3: memref<1x64xf32, #tpu.memory_space<vmem>>, %arg4: memref<64x32xbf16, #tpu.memory_space<vmem>>, %arg5: memref<3x32xf32, #tpu.memory_space<vmem>>, %arg6: memref<16x32xbf16, #tpu.memory_space<vmem>>) attributes {dimension_semantics = [#tpu.dimension_semantics<parallel>], iteration_bounds = array<i64: 1>, scalar_prefetch = 0 : i64, scratch_operands = 0 : i64, tpu.core_type = #tpu.core_type<tc>, window_params = [{transform_indices = @transform_0, window_bounds = array<i64: 16, 32>}, {pipeline_mode = #tpu.pipeline_mode<synchronous>, transform_indices = @transform_1, window_bounds = array<i64: 32, 64>}, {pipeline_mode = #tpu.pipeline_mode<synchronous>, transform_indices = @transform_2, window_bounds = array<i64: 1, 64>}, {pipeline_mode = #tpu.pipeline_mode<synchronous>, transform_indices = @transform_3, window_bounds = array<i64: 64, 32>}, {pipeline_mode = #tpu.pipeline_mode<synchronous>, transform_indices = @transform_4, window_bounds = array<i64: 3, 32>}, {transform_indices = @transform_5, window_bounds = array<i64: 16, 32>}]} {
    %c0 = arith.constant 0 : index
    %c0_0 = arith.constant 0 : index
    %0 = vector.load %arg1[%c0, %c0_0] : memref<16x32xbf16, #tpu.memory_space<vmem>>, vector<16x32xbf16>
    %c0_1 = arith.constant 0 : index
    %c0_2 = arith.constant 0 : index
    %1 = vector.load %arg2[%c0_1, %c0_2] : memref<32x64xbf16, #tpu.memory_space<vmem>>, vector<32x64xbf16>
    %cst = arith.constant dense<0.000000e+00> : vector<16x64xf32>
    %2 = tpu.matmul %0, %1, %cst {dimension_numbers = #tpu.dot_dimension_numbers<[1], [0], [0], [1], [0, 0, 1, 1], [], []>} : vector<16x32xbf16>, vector<32x64xbf16>, vector<16x64xf32> -> vector<16x64xf32>
    %c0_3 = arith.constant 0 : index
    %c0_4 = arith.constant 0 : index
    %3 = vector.load %arg3[%c0_3, %c0_4] : memref<1x64xf32, #tpu.memory_space<vmem>>, vector<1x64xf32>
    %4 = vector.broadcast %3 : vector<1x64xf32> to vector<16x64xf32>
    %5 = arith.addf %2, %4 : vector<16x64xf32>
    %cst_5 = arith.constant 0.000000e+00 : f32
    %6 = vector.broadcast %cst_5 : f32 to vector<16x64xf32>
    %7 = arith.maximumf %5, %6 : vector<16x64xf32>
    %8 = arith.truncf %7 : vector<16x64xf32> to vector<16x64xbf16>
    %c0_6 = arith.constant 0 : index
    %c0_7 = arith.constant 0 : index
    %9 = vector.load %arg4[%c0_6, %c0_7] : memref<64x32xbf16, #tpu.memory_space<vmem>>, vector<64x32xbf16>
    %cst_8 = arith.constant dense<0.000000e+00> : vector<16x32xf32>
    %10 = tpu.matmul %8, %9, %cst_8 {dimension_numbers = #tpu.dot_dimension_numbers<[1], [0], [0], [1], [0, 0, 1, 1], [], []>} : vector<16x64xbf16>, vector<64x32xbf16>, vector<16x32xf32> -> vector<16x32xf32>
    %c0_9 = arith.constant 0 : index
    %c0_10 = arith.constant 0 : index
    %11 = vector.load %arg5[%c0_9, %c0_10] : memref<3x32xf32, #tpu.memory_space<vmem>>, vector<1x32xf32>
    %12 = vector.broadcast %11 : vector<1x32xf32> to vector<16x32xf32>
    %13 = arith.addf %10, %12 : vector<16x32xf32>
    %14 = arith.extf %0 : vector<16x32xbf16> to vector<16x32xf32>
    %15 = arith.addf %14, %13 : vector<16x32xf32>
    %cst_11 = arith.constant dense<0.000000e+00> : vector<16xf32>
    %16 = vector.multi_reduction <add>, %15, %cst_11 [1] : vector<16x32xf32> to vector<16xf32>
    %17 = vector.shape_cast %16 : vector<16xf32> to vector<16x1xf32>
    %cst_12 = arith.constant 3.200000e+01 : f32
    %18 = vector.broadcast %cst_12 : f32 to vector<16x1xf32>
    %19 = arith.divf %17, %18 : vector<16x1xf32>
    %20 = vector.broadcast %19 : vector<16x1xf32> to vector<16x32xf32>
    %21 = arith.subf %15, %20 : vector<16x32xf32>
    %22 = arith.mulf %21, %21 : vector<16x32xf32>
    %cst_13 = arith.constant dense<0.000000e+00> : vector<16xf32>
    %23 = vector.multi_reduction <add>, %22, %cst_13 [1] : vector<16x32xf32> to vector<16xf32>
    %24 = vector.shape_cast %23 : vector<16xf32> to vector<16x1xf32>
    %cst_14 = arith.constant 3.200000e+01 : f32
    %25 = vector.broadcast %cst_14 : f32 to vector<16x1xf32>
    %26 = arith.divf %24, %25 : vector<16x1xf32>
    %27 = vector.broadcast %19 : vector<16x1xf32> to vector<16x32xf32>
    %28 = arith.subf %15, %27 : vector<16x32xf32>
    %cst_15 = arith.constant 9.99999974E-6 : f32
    %29 = vector.broadcast %cst_15 : f32 to vector<16x1xf32>
    %30 = arith.addf %26, %29 : vector<16x1xf32>
    %31 = math.rsqrt %30 : vector<16x1xf32>
    %32 = vector.broadcast %31 : vector<16x1xf32> to vector<16x32xf32>
    %33 = arith.mulf %28, %32 : vector<16x32xf32>
    %c1 = arith.constant 1 : index
    %c0_16 = arith.constant 0 : index
    %34 = vector.load %arg5[%c1, %c0_16] : memref<3x32xf32, #tpu.memory_space<vmem>>, vector<1x32xf32>
    %35 = vector.broadcast %34 : vector<1x32xf32> to vector<16x32xf32>
    %36 = arith.mulf %33, %35 : vector<16x32xf32>
    %c2 = arith.constant 2 : index
    %c0_17 = arith.constant 0 : index
    %37 = vector.load %arg5[%c2, %c0_17] : memref<3x32xf32, #tpu.memory_space<vmem>>, vector<1x32xf32>
    %38 = vector.broadcast %37 : vector<1x32xf32> to vector<16x32xf32>
    %39 = arith.addf %36, %38 : vector<16x32xf32>
    %40 = arith.truncf %39 : vector<16x32xf32> to vector<16x32xbf16>
    %c0_18 = arith.constant 0 : index
    %c0_19 = arith.constant 0 : index
    %41 = vector.load %arg6[%c0_18, %c0_19] : memref<16x32xbf16, #tpu.memory_space<vmem>>, vector<16x32xbf16>
    tpu.vector_store %arg6[%c0_18, %c0_19], %40 {strides = array<i32>} : memref<16x32xbf16, #tpu.memory_space<vmem>>, vector<16x32xbf16>,
    return
  }
  func.func @transform_0(%arg0: i32) -> (i32, i32) {
    %c0_i32 = arith.constant 0 : i32
    %c0_i32_0 = arith.constant 0 : i32
    return %arg0, %c0_i32 : i32, i32
  }
  func.func @transform_1(%arg0: i32) -> (i32, i32) {
    %c0_i32 = arith.constant 0 : i32
    %c0_i32_0 = arith.constant 0 : i32
    %c0_i32_1 = arith.constant 0 : i32
    return %c0_i32, %c0_i32_0 : i32, i32
  }
  func.func @transform_2(%arg0: i32) -> (i32, i32) {
    %c0_i32 = arith.constant 0 : i32
    %c0_i32_0 = arith.constant 0 : i32
    %c0_i32_1 = arith.constant 0 : i32
    return %c0_i32, %c0_i32_0 : i32, i32
  }
  func.func @transform_3(%arg0: i32) -> (i32, i32) {
    %c0_i32 = arith.constant 0 : i32
    %c0_i32_0 = arith.constant 0 : i32
    %c0_i32_1 = arith.constant 0 : i32
    return %c0_i32, %c0_i32_0 : i32, i32
  }
  func.func @transform_4(%arg0: i32) -> (i32, i32) {
    %c0_i32 = arith.constant 0 : i32
    %c0_i32_0 = arith.constant 0 : i32
    %c0_i32_1 = arith.constant 0 : i32
    return %c0_i32, %c0_i32_0 : i32, i32
  }
  func.func @transform_5(%arg0: i32) -> (i32, i32) {
    %c0_i32 = arith.constant 0 : i32
    %c0_i32_0 = arith.constant 0 : i32
    return %arg0, %c0_i32 : i32, i32
  }
}

module attributes {stable_mosaic.version = 11 : i64} {
  func.func @_mha_fused_kernel(%arg0: i32, %arg1: i32, %arg2: memref<1x8x32xbf16, #tpu.memory_space<vmem>>, %arg3: memref<1x8x32xbf16, #tpu.memory_space<vmem>>, %arg4: memref<1x1x8xf32, #tpu.memory_space<vmem>>, %arg5: memref<32x32xbf16, #tpu.memory_space<vmem>>, %arg6: memref<64x32xbf16, #tpu.memory_space<vmem>>, %arg7: memref<32x32xbf16, #tpu.memory_space<vmem>>, %arg8: memref<96x1xf32, #tpu.memory_space<vmem>>, %arg9: memref<3x32xf32, #tpu.memory_space<vmem>>, %arg10: memref<1x8x32xbf16, #tpu.memory_space<vmem>>) attributes {dimension_semantics = [#tpu.dimension_semantics<parallel>, #tpu.dimension_semantics<parallel>], iteration_bounds = array<i64: 2, 1>, scalar_prefetch = 0 : i64, scratch_operands = 0 : i64, tpu.core_type = #tpu.core_type<tc>, window_params = [{transform_indices = @transform_0, window_bounds = array<i64: 1, 8, 32>}, {transform_indices = @transform_1, window_bounds = array<i64: 1, 8, 32>}, {transform_indices = @transform_2, window_bounds = array<i64: 1, 1, 8>}, {pipeline_mode = #tpu.pipeline_mode<synchronous>, transform_indices = @transform_3, window_bounds = array<i64: 32, 32>}, {pipeline_mode = #tpu.pipeline_mode<synchronous>, transform_indices = @transform_4, window_bounds = array<i64: 64, 32>}, {pipeline_mode = #tpu.pipeline_mode<synchronous>, transform_indices = @transform_5, window_bounds = array<i64: 32, 32>}, {pipeline_mode = #tpu.pipeline_mode<synchronous>, transform_indices = @transform_6, window_bounds = array<i64: 96, 1>}, {pipeline_mode = #tpu.pipeline_mode<synchronous>, transform_indices = @transform_7, window_bounds = array<i64: 3, 32>}, {transform_indices = @transform_8, window_bounds = array<i64: 1, 8, 32>}]} {
    %c0 = arith.constant 0 : index
    %c0_0 = arith.constant 0 : index
    %c0_1 = arith.constant 0 : index
    %0 = vector.load %arg2[%c0, %c0_0, %c0_1] : memref<1x8x32xbf16, #tpu.memory_space<vmem>>, vector<1x8x32xbf16>
    %1 = vector.shape_cast %0 : vector<1x8x32xbf16> to vector<8x32xbf16>
    %c0_2 = arith.constant 0 : index
    %c0_3 = arith.constant 0 : index
    %c0_4 = arith.constant 0 : index
    %2 = vector.load %arg3[%c0_2, %c0_3, %c0_4] : memref<1x8x32xbf16, #tpu.memory_space<vmem>>, vector<1x8x32xbf16>
    %3 = vector.shape_cast %2 : vector<1x8x32xbf16> to vector<8x32xbf16>
    %c0_5 = arith.constant 0 : index
    %c0_6 = arith.constant 0 : index
    %4 = vector.load %arg5[%c0_5, %c0_6] : memref<32x32xbf16, #tpu.memory_space<vmem>>, vector<32x32xbf16>
    %cst = arith.constant dense<0.000000e+00> : vector<32x8xf32>
    %5 = tpu.matmul %4, %1, %cst {dimension_numbers = #tpu.dot_dimension_numbers<[1], [1], [0], [0], [0, 0, 1, 0], [], []>} : vector<32x32xbf16>, vector<8x32xbf16>, vector<32x8xf32> -> vector<32x8xf32>
    %c0_7 = arith.constant 0 : index
    %c0_8 = arith.constant 0 : index
    %6 = vector.load %arg8[%c0_7, %c0_8] : memref<96x1xf32, #tpu.memory_space<vmem>>, vector<32x1xf32>
    %7 = vector.broadcast %6 : vector<32x1xf32> to vector<32x8xf32>
    %8 = arith.addf %5, %7 : vector<32x8xf32>
    %c0_9 = arith.constant 0 : index
    %c0_10 = arith.constant 0 : index
    %9 = vector.load %arg6[%c0_9, %c0_10] : memref<64x32xbf16, #tpu.memory_space<vmem>>, vector<64x32xbf16>
    %cst_11 = arith.constant dense<0.000000e+00> : vector<64x8xf32>
    %10 = tpu.matmul %9, %3, %cst_11 {dimension_numbers = #tpu.dot_dimension_numbers<[1], [1], [0], [0], [0, 0, 1, 0], [], []>} : vector<64x32xbf16>, vector<8x32xbf16>, vector<64x8xf32> -> vector<64x8xf32>
    %c32 = arith.constant 32 : index
    %c0_12 = arith.constant 0 : index
    %11 = vector.load %arg8[%c32, %c0_12] : memref<96x1xf32, #tpu.memory_space<vmem>>, vector<64x1xf32>
    %12 = vector.broadcast %11 : vector<64x1xf32> to vector<64x8xf32>
    %13 = arith.addf %10, %12 : vector<64x8xf32>
    %14 = vector.shape_cast %8 : vector<32x8xf32> to vector<2x16x8xf32>
    %15 = tpu.transpose %14, [0, 2, 1] : vector<2x16x8xf32> -> vector<2x8x16xf32>
    %16 = vector.extract_strided_slice %13 {offsets = [0, 0], sizes = [32, 8], strides = [1, 1]} : vector<64x8xf32> to vector<32x8xf32>
    %17 = vector.shape_cast %16 : vector<32x8xf32> to vector<2x16x8xf32>
    %18 = vector.extract_strided_slice %13 {offsets = [32, 0], sizes = [32, 8], strides = [1, 1]} : vector<64x8xf32> to vector<32x8xf32>
    %19 = vector.shape_cast %18 : vector<32x8xf32> to vector<2x16x8xf32>
    %c0_13 = arith.constant 0 : index
    %c0_14 = arith.constant 0 : index
    %c0_15 = arith.constant 0 : index
    %20 = vector.load %arg4[%c0_13, %c0_14, %c0_15] : memref<1x1x8xf32, #tpu.memory_space<vmem>>, vector<1x1x8xf32>
    %21 = vector.shape_cast %20 : vector<1x1x8xf32> to vector<1x8xf32>
    %22 = vector.shape_cast %21 : vector<1x8xf32> to vector<1x8xf32>
    %23 = vector.broadcast %22 : vector<1x8xf32> to vector<8x8xf32>
    %24 = arith.truncf %15 : vector<2x8x16xf32> to vector<2x8x16xbf16>
    %25 = arith.truncf %17 : vector<2x16x8xf32> to vector<2x16x8xbf16>
    "tpu.trace_start"() <{level = 10 : i32, message = "hld,hds->hls"}> : () -> ()
    %cst_16 = arith.constant dense<0.000000e+00> : vector<2x8x8xf32>
    %26 = tpu.matmul %24, %25, %cst_16 {dimension_numbers = #tpu.dot_dimension_numbers<[2], [1], [1], [2], [0, 0, 0, 1, 1, 2], [0], [0]>} : vector<2x8x16xbf16>, vector<2x16x8xbf16>, vector<2x8x8xf32> -> vector<2x8x8xf32>
    "tpu.trace_stop"() : () -> ()
    %27 = vector.shape_cast %23 : vector<8x8xf32> to vector<1x8x8xf32>
    %28 = vector.broadcast %27 : vector<1x8x8xf32> to vector<2x8x8xf32>
    %29 = arith.addf %26, %28 : vector<2x8x8xf32>
    %cst_17 = arith.constant dense<0xFF800000> : vector<2x8xf32>
    %30 = vector.multi_reduction <maximumf>, %29, %cst_17 [2] : vector<2x8x8xf32> to vector<2x8xf32>
    %31 = vector.shape_cast %30 : vector<2x8xf32> to vector<2x8x1xf32>
    %32 = vector.broadcast %31 : vector<2x8x1xf32> to vector<2x8x8xf32>
    %33 = arith.subf %29, %32 : vector<2x8x8xf32>
    %34 = math.exp %33 : vector<2x8x8xf32>
    %cst_18 = arith.constant dense<0.000000e+00> : vector<2x8xf32>
    %35 = vector.multi_reduction <add>, %34, %cst_18 [2] : vector<2x8x8xf32> to vector<2x8xf32>
    %36 = vector.shape_cast %35 : vector<2x8xf32> to vector<2x8x1xf32>
    %37 = tpu.reciprocal %36 {approx = true} : vector<2x8x1xf32> -> vector<2x8x1xf32>
    %38 = vector.broadcast %37 : vector<2x8x1xf32> to vector<2x8x8xf32>
    %39 = arith.mulf %34, %38 : vector<2x8x8xf32>
    %40 = arith.truncf %19 : vector<2x16x8xf32> to vector<2x16x8xbf16>
    %41 = arith.truncf %39 : vector<2x8x8xf32> to vector<2x8x8xbf16>
    "tpu.trace_start"() <{level = 10 : i32, message = "hds,hls->hdl"}> : () -> ()
    %cst_19 = arith.constant dense<0.000000e+00> : vector<2x16x8xf32>
    %42 = tpu.matmul %40, %41, %cst_19 {dimension_numbers = #tpu.dot_dimension_numbers<[2], [2], [1], [1], [0, 0, 0, 1, 1, 1], [0], [0]>} : vector<2x16x8xbf16>, vector<2x8x8xbf16>, vector<2x16x8xf32> -> vector<2x16x8xf32>
    "tpu.trace_stop"() : () -> ()
    %43 = vector.shape_cast %42 : vector<2x16x8xf32> to vector<32x8xf32>
    %44 = tpu.transpose %43, [1, 0] : vector<32x8xf32> -> vector<8x32xf32>
    %45 = arith.truncf %44 : vector<8x32xf32> to vector<8x32xbf16>
    %c0_20 = arith.constant 0 : index
    %c0_21 = arith.constant 0 : index
    %46 = vector.load %arg7[%c0_20, %c0_21] : memref<32x32xbf16, #tpu.memory_space<vmem>>, vector<32x32xbf16>
    %cst_22 = arith.constant dense<0.000000e+00> : vector<8x32xf32>
    %47 = tpu.matmul %45, %46, %cst_22 {dimension_numbers = #tpu.dot_dimension_numbers<[1], [0], [0], [1], [0, 0, 1, 1], [], []>} : vector<8x32xbf16>, vector<32x32xbf16>, vector<8x32xf32> -> vector<8x32xf32>
    %c0_23 = arith.constant 0 : index
    %c0_24 = arith.constant 0 : index
    %48 = vector.load %arg9[%c0_23, %c0_24] : memref<3x32xf32, #tpu.memory_space<vmem>>, vector<1x32xf32>
    %49 = vector.broadcast %48 : vector<1x32xf32> to vector<8x32xf32>
    %50 = arith.addf %47, %49 : vector<8x32xf32>
    %51 = arith.extf %1 : vector<8x32xbf16> to vector<8x32xf32>
    %52 = arith.addf %51, %50 : vector<8x32xf32>
    %cst_25 = arith.constant dense<0.000000e+00> : vector<8xf32>
    %53 = vector.multi_reduction <add>, %52, %cst_25 [1] : vector<8x32xf32> to vector<8xf32>
    %54 = vector.shape_cast %53 : vector<8xf32> to vector<8x1xf32>
    %cst_26 = arith.constant 3.200000e+01 : f32
    %55 = vector.broadcast %cst_26 : f32 to vector<8x1xf32>
    %56 = arith.divf %54, %55 : vector<8x1xf32>
    %57 = vector.broadcast %56 : vector<8x1xf32> to vector<8x32xf32>
    %58 = arith.subf %52, %57 : vector<8x32xf32>
    %59 = arith.mulf %58, %58 : vector<8x32xf32>
    %cst_27 = arith.constant dense<0.000000e+00> : vector<8xf32>
    %60 = vector.multi_reduction <add>, %59, %cst_27 [1] : vector<8x32xf32> to vector<8xf32>
    %61 = vector.shape_cast %60 : vector<8xf32> to vector<8x1xf32>
    %cst_28 = arith.constant 3.200000e+01 : f32
    %62 = vector.broadcast %cst_28 : f32 to vector<8x1xf32>
    %63 = arith.divf %61, %62 : vector<8x1xf32>
    %64 = vector.broadcast %56 : vector<8x1xf32> to vector<8x32xf32>
    %65 = arith.subf %52, %64 : vector<8x32xf32>
    %cst_29 = arith.constant 9.99999974E-6 : f32
    %66 = vector.broadcast %cst_29 : f32 to vector<8x1xf32>
    %67 = arith.addf %63, %66 : vector<8x1xf32>
    %68 = math.rsqrt %67 : vector<8x1xf32>
    %69 = vector.broadcast %68 : vector<8x1xf32> to vector<8x32xf32>
    %70 = arith.mulf %65, %69 : vector<8x32xf32>
    %c1 = arith.constant 1 : index
    %c0_30 = arith.constant 0 : index
    %71 = vector.load %arg9[%c1, %c0_30] : memref<3x32xf32, #tpu.memory_space<vmem>>, vector<1x32xf32>
    %72 = vector.broadcast %71 : vector<1x32xf32> to vector<8x32xf32>
    %73 = arith.mulf %70, %72 : vector<8x32xf32>
    %c2 = arith.constant 2 : index
    %c0_31 = arith.constant 0 : index
    %74 = vector.load %arg9[%c2, %c0_31] : memref<3x32xf32, #tpu.memory_space<vmem>>, vector<1x32xf32>
    %75 = vector.broadcast %74 : vector<1x32xf32> to vector<8x32xf32>
    %76 = arith.addf %73, %75 : vector<8x32xf32>
    %77 = arith.truncf %76 : vector<8x32xf32> to vector<8x32xbf16>
    %c0_32 = arith.constant 0 : index
    %c0_33 = arith.constant 0 : index
    %c0_34 = arith.constant 0 : index
    %78 = vector.load %arg10[%c0_32, %c0_33, %c0_34] : memref<1x8x32xbf16, #tpu.memory_space<vmem>>, vector<1x8x32xbf16>
    %79 = vector.shape_cast %78 : vector<1x8x32xbf16> to vector<8x32xbf16>
    %80 = vector.shape_cast %77 : vector<8x32xbf16> to vector<1x8x32xbf16>
    tpu.vector_store %arg10[%c0_32, %c0_33, %c0_34], %80 {strides = array<i32>} : memref<1x8x32xbf16, #tpu.memory_space<vmem>>, vector<1x8x32xbf16>,
    return
  }
  func.func @transform_0(%arg0: i32, %arg1: i32) -> (i32, i32, i32) {
    %c0_i32 = arith.constant 0 : i32
    %c0_i32_0 = arith.constant 0 : i32
    return %arg0, %arg1, %c0_i32 : i32, i32, i32
  }
  func.func @transform_1(%arg0: i32, %arg1: i32) -> (i32, i32, i32) {
    %c0_i32 = arith.constant 0 : i32
    %c0_i32_0 = arith.constant 0 : i32
    %c0_i32_1 = arith.constant 0 : i32
    return %arg0, %c0_i32, %c0_i32_0 : i32, i32, i32
  }
  func.func @transform_2(%arg0: i32, %arg1: i32) -> (i32, i32, i32) {
    %c0_i32 = arith.constant 0 : i32
    %c0_i32_0 = arith.constant 0 : i32
    %c0_i32_1 = arith.constant 0 : i32
    return %arg0, %c0_i32, %c0_i32_0 : i32, i32, i32
  }
  func.func @transform_3(%arg0: i32, %arg1: i32) -> (i32, i32) {
    %c0_i32 = arith.constant 0 : i32
    %c0_i32_0 = arith.constant 0 : i32
    %c0_i32_1 = arith.constant 0 : i32
    return %c0_i32, %c0_i32_0 : i32, i32
  }
  func.func @transform_4(%arg0: i32, %arg1: i32) -> (i32, i32) {
    %c0_i32 = arith.constant 0 : i32
    %c0_i32_0 = arith.constant 0 : i32
    %c0_i32_1 = arith.constant 0 : i32
    return %c0_i32, %c0_i32_0 : i32, i32
  }
  func.func @transform_5(%arg0: i32, %arg1: i32) -> (i32, i32) {
    %c0_i32 = arith.constant 0 : i32
    %c0_i32_0 = arith.constant 0 : i32
    %c0_i32_1 = arith.constant 0 : i32
    return %c0_i32, %c0_i32_0 : i32, i32
  }
  func.func @transform_6(%arg0: i32, %arg1: i32) -> (i32, i32) {
    %c0_i32 = arith.constant 0 : i32
    %c0_i32_0 = arith.constant 0 : i32
    %c0_i32_1 = arith.constant 0 : i32
    return %c0_i32, %c0_i32_0 : i32, i32
  }
  func.func @transform_7(%arg0: i32, %arg1: i32) -> (i32, i32) {
    %c0_i32 = arith.constant 0 : i32
    %c0_i32_0 = arith.constant 0 : i32
    %c0_i32_1 = arith.constant 0 : i32
    return %c0_i32, %c0_i32_0 : i32, i32
  }
  func.func @transform_8(%arg0: i32, %arg1: i32) -> (i32, i32, i32) {
    %c0_i32 = arith.constant 0 : i32
    %c0_i32_0 = arith.constant 0 : i32
    return %arg0, %arg1, %c0_i32 : i32, i32, i32
  }
}

</mosaic_0001>

<bundles_post_ra>
// kernel: forward.21
= control target key start
LH: loop header
LB: loop body
LE: loop exit
PB: predicated region body
PF: predicated region fallthrough
CT: control target
= control target key end

     0   :  { %v118_v0 = vmov 0.0   ;;  %vm119_vm0 = vmmov 0   ;;  %vm45_vm1 = vcmask 261120   ;;  %vm90_vm2 = vcmask 130048   ;;  %s158_s1 = inlined_call_operand.vmem [shape: bf16[32,16], index: 1, kind: input, shape index: {}]   ;;  %s159_s0 = inlined_call_operand.vmem [shape: bf16[16,32], index: 0, kind: input, shape index: {}]   ;;  %s160_s2 = inlined_call_operand.vmem [shape: f32[1,16], index: 2, kind: input, shape index: {}]   ;;  %s161_s3 = inlined_call_operand.vmem [shape: f32[16,16], index: 3, kind: output, shape index: {}]  }
   0x1   :  { %105 = vmatprep.subr.bf16.mxu0 %v118_v0  ;;  %v115_v1 = vld [vmem:[%s158_s1] sm:$0xff]   ;;  %109 = vmatprep.mubr.msk.bf16.mxu0 %vm119_vm0, %v118_v0  ;;  %v116_v2 = vld [vmem:[%s158_s1 + $0x8] sm:$0xff]  }
   0x2   :  { %106 = vmatpush3.bf16.msra.mxu0 %v115_v1  ;;  %v117_v3 = vld [vmem:[%s159_s0] sm:$0xff]  }
   0x3   :  { %107 = vmatprep.subr.bf16.mxu0 %v118_v0  ;;  %v97_v4 = vld [vmem:[%s160_s2] ss:$0 sm:$0xff] }
   0x6   :  { %108 = vmatpush3.bf16.msra.mxu0 %v116_v2 }
   0x9   :  { %110 = vmatmul.mubr.msk.bf16.vlgmr.msra.gmra.mrb[0].mxu0 %vm45_vm1, %v117_v3 }
  0xdc   :  { %v83_v5 = vpop.f32.mrb[0].mxu0 }
  0xdd   :  { %v84_v6 = vadd.f32 %v97_v4, %v83_v5  ;;  %v111_v7 = vpop.f32.mrb[1].mxu0 }
  0xde   :  { %v86_v8 = vpop.f32.mrb[2].mxu0 }
  0xdf   :  { %91 = vst.msk [vmem:[%s161_s3] sm:$0xff] %vm90_vm2, %v84_v6  ;;  %v87_v9 = vadd.f32 %v97_v4, %v86_v8  ;;  %v112_v10 = vpop.f32.mrb[3].mxu0 }
  0xe1   :  { %92 = vst.msk [vmem:[%s161_s3 + $0x8] sm:$0xff] %vm90_vm2, %v87_v9 }

// kernel: forward.12
= control target key start
LH: loop header
LB: loop body
LE: loop exit
PB: predicated region body
PF: predicated region fallthrough
CT: control target
= control target key end

     0   :  { %v300_v0 = vmov 0.0   ;;  %vm301_vm0 = vmmov 0   ;;  %vm51_vm1 = vcmask 261120   ;;  %vm136_vm2 = vcmask 523264   ;;  %s376_s1 = inlined_call_operand.vmem [shape: bf16[32,64], index: 1, kind: input, shape index: {}]   ;;  %s377_s0 = inlined_call_operand.vmem [shape: bf16[16,32], index: 0, kind: input, shape index: {}]   ;;  %s378_s3 = inlined_call_operand.vmem [shape: bf16[64,32], index: 3, kind: input, shape index: {}]   ;;  %s379_s2 = inlined_call_operand.vmem [shape: f32[1,64], index: 2, kind: input, shape index: {}]   ;;  %s380_s4 = inlined_call_operand.vmem [shape: f32[3,32], index: 4, kind: input, shape index: {}]   ;;  %s381_s5 = inlined_call_operand.vmem [shape: bf16[16,32], index: 5, kind: output, shape index: {}]  }
   0x1   :  { %266 = vmatprep.subr.bf16.mxu0 %v300_v0  ;;  %v288_v1 = vld [vmem:[%s376_s1] sm:$0xff]   ;;  %270 = vmatprep.mubr.msk.bf16.mxu0 %vm301_vm0, %v300_v0  ;;  %v289_v2 = vld [vmem:[%s376_s1 + $0x8] sm:$0xff]   ;;  %v293_v6 = vld [vmem:[%s378_s3 + $0x10] sm:$0xff]   ;;  %vm234_vm3 = vcmask 257024  }
   0x2   :  { %274 = vmatprep.subr.bf16.mxu1 %v300_v0  ;;  %282 = vmatprep.mubr.msk.bf16.mxu1 %vm301_vm0, %v300_v0  ;;  %v21_v3 = vld [vmem:[%s377_s0] sm:$0xff]   ;;  %v292_v5 = vld [vmem:[%s378_s3 + $0x8] sm:$0xff]   ;;  %v294_v7 = vld [vmem:[%s378_s3 + $0x18] sm:$0xff]  }
   0x3   :  { %267 = vmatpush3.bf16.msra.mxu0 %v288_v1  ;;  %v291_v4 = vld [vmem:[%s378_s3] sm:$0xff]   ;;  %v181_v19 = vunpack.c.l.bf16 %v21_v3  ;;  %v182_v23 = vunpack.c.h.bf16 %v21_v3 }
   0x4   :  { %268 = vmatprep.subr.bf16.mxu0 %v300_v0  ;;  %275 = vmatpush3.bf16.msra.mxu1 %v291_v4  ;;  %v241_v8 = vld [vmem:[%s379_s2] ss:$0 sm:$0xff]  ;;  %v252_v48 = vld [vmem:[%s380_s4 + $0x1] ss:$0 sm:$0xff]  ;;  %v253_v50 = vld [vmem:[%s380_s4 + $0x2] ss:$0 sm:$0xff] }
   0x5   :  { %276 = vmatprep.subr.bf16.mxu1 %v300_v0  ;;  %v246_v18 = vld [vmem:[%s380_s4] ss:$0 sm:$0xff] }
   0x7   :  { %269 = vmatpush3.bf16.msra.mxu0 %v289_v2 }
   0x8   :  { %277 = vmatpush3.bf16.msra.mxu1 %v292_v5 }
   0x9   :  { %278 = vmatprep.subr.bf16.mxu1 %v300_v0 }
   0xa   :  { %271 = vmatmul.mubr.msk.bf16.vlgmr.msra.gmra.mrb[0].mxu0 %vm51_vm1, %v21_v3 }
   0xc   :  { %279 = vmatpush3.bf16.msra.mxu1 %v293_v6 }
   0xd   :  { %280 = vmatprep.subr.bf16.mxu1 %v300_v0 }
  0x10   :  { %281 = vmatpush3.bf16.msra.mxu1 %v294_v7 }
  0xdd   :  { %v89_v9 = vpop.f32.mrb[0].mxu0 }
  0xde   :  { %v90_v10 = vadd.f32 %v241_v8, %v89_v9  ;;  %v272_v11 = vpop.f32.mrb[1].mxu0 }
  0xdf   :  { %v92_v12 = vpop.f32.mrb[2].mxu0 }
  0xe0   :  { %v93_v13 = vadd.f32 %v241_v8, %v92_v12  ;;  %v273_v14 = vpop.f32.mrb[3].mxu0  ;;  %v96_v15 = vmax.f32 %v90_v10, 0.0 }
  0xe2   :  { %v97_v16 = vmax.f32 %v93_v13, 0.0 }
  0xe4   :  { %v98_v17 = vpack.c.bf16 %v97_v16, %v96_v15 }
  0xe6   :  { %283 = vmatmul.mubr.msk.bf16.vlgmr.msra.gmra.mrb[0].mxu1 %vm136_vm2, %v98_v17 }
 0x1b9   :  { %v174_v20 = vpop.f32.mrb[0].mxu1 }
 0x1ba   :  { %v175_v21 = vadd.f32 %v246_v18, %v174_v20  ;;  %v284_v22 = vpop.f32.mrb[1].mxu1 }
 0x1bb   :  { %v177_v24 = vpop.f32.mrb[2].mxu1 }
 0x1bc   :  { %v178_v25 = vadd.f32 %v246_v18, %v177_v24  ;;  %v285_v26 = vpop.f32.mrb[3].mxu1  ;;  %v183_v27 = vadd.f32 %v181_v19, %v175_v21 }
 0x1be   :  { %v185_v28 = vsel %vm51_vm1, %v183_v27, 0.0  ;;  %v184_v29 = vadd.f32 %v182_v23, %v178_v25 }
 0x1bf   :  { %186 = vadd.xlane.f32.xlu0 %v185_v28 }
 0x1c0   :  { %v188_v30 = vsel %vm51_vm1, %v184_v29, 0.0 }
 0x1c3   :  { %189 = vadd.xlane.f32.xlu0 %v188_v30 }
 0x24c   :  { %v187_v31 = vpop.xlane.xlu0 %186 }
 0x24d   :  { %v192_v32 = vmul.f32 0.03125, %v187_v31 }
 0x24f   :  { %v194_v33 = vsub.f32 %v183_v27, %v192_v32 }
 0x250   :  { %v190_v34 = vpop.xlane.xlu0 %189 }
 0x251   :  { %v193_v35 = vmul.f32 0.03125, %v190_v34  ;;  %v196_v36 = vmul.f32 %v194_v33, %v194_v33 }
 0x253   :  { %v195_v37 = vsub.f32 %v184_v29, %v193_v35  ;;  %v198_v38 = vsel %vm51_vm1, %v196_v36, 0.0 }
 0x254   :  { %199 = vadd.xlane.f32.xlu1 %v198_v38 }
 0x255   :  { %v197_v39 = vmul.f32 %v195_v37, %v195_v37 }
 0x257   :  { %v201_v40 = vsel %vm51_vm1, %v197_v39, 0.0 }
 0x258   :  { %202 = vadd.xlane.f32.xlu1 %v201_v40 }
 0x2e1   :  { %v200_v41 = vpop.xlane.xlu1 %199 }
 0x2e2   :  { %v204_v42 = vmul.f32 0.03125, %v200_v41 }
 0x2e4   :  { %v206_v43 = vadd.f32 1e-05, %v204_v42 }
 0x2e5   :  { %v203_v44 = vpop.xlane.xlu1 %202 }
 0x2e6   :  { %296 = vrsqrt.f32 %v206_v43  ;;  %v205_v45 = vmul.f32 0.03125, %v203_v44 }
 0x2e8   :  { %v207_v46 = vadd.f32 1e-05, %v205_v45 }
 0x2ea   :  { %298 = vrsqrt.f32 %v207_v46 }
 0x2f0   :  { %v297_v47 = vpop.eup %296 }
 0x2f1   :  { %v210_v49 = vmul.f32 %v297_v47, %v194_v33 }
 0x2f3   :  { %v217_v51 = vmul.f32 %v252_v48, %v210_v49 }
 0x2f4   :  { %v299_v52 = vpop.eup %298 }
 0x2f5   :  { %v224_v53 = vadd.f32 %v253_v50, %v217_v51  ;;  %v211_v54 = vmul.f32 %v299_v52, %v195_v37 }
 0x2f7   :  { %v256_v55 = vpack.c.bf16 %v224_v53, %v224_v53  ;;  %v218_v56 = vmul.f32 %v252_v48, %v211_v54 }
 0x2f9   :  { %235 = vst.msk [vmem:[%s381_s5] sm:$0xf] %vm234_vm3, %v256_v55  ;;  %v225_v57 = vadd.f32 %v253_v50, %v218_v56 }
 0x2fb   :  { %v257_v58 = vpack.c.bf16 %v225_v57, %v225_v57 }
 0x2fd   :  { %236 = vst.msk [vmem:[%s381_s5 + $0x4] sm:$0xf] %vm234_vm3, %v257_v58 }

// kernel: forward.15
= control target key start
LH: loop header
LB: loop body
LE: loop exit
PB: predicated region body
PF: predicated region fallthrough
CT: control target
= control target key end

     0   :  { %s1356_s27 = smov 0   ;;  %s1358_s28 = smov 0   ;;  %s1516_s0 = inlined_call_operand.vmem [shape: bf16[2,8,32], index: 0, kind: input, shape index: {}, may-alias: {0,1}]   ;;  %s1517_s1 = inlined_call_operand.vmem [shape: bf16[2,8,32], index: 1, kind: input, shape index: {}, may-alias: {0,1}]   ;;  %s1518_s2 = inlined_call_operand.vmem [shape: f32[2,1,8], index: 2, kind: input, shape index: {}]   ;;  %s1519_s3 = inlined_call_operand.vmem [shape: bf16[32,32], index: 3, kind: input, shape index: {}]   ;;  %s1520_s4 = inlined_call_operand.vmem [shape: bf16[64,32], index: 4, kind: input, shape index: {}]   ;;  %s1521_s5 = inlined_call_operand.vmem [shape: bf16[32,32], index: 5, kind: input, shape index: {}]   ;;  %s1522_s6 = inlined_call_operand.vmem [shape: f32[96,1], index: 6, kind: input, shape index: {}]   ;;  %s1523_s7 = inlined_call_operand.vmem [shape: f32[3,32], index: 7, kind: input, shape index: {}]   ;;  %s1524_s8 = inlined_call_operand.vmem [shape: bf16[2,8,32], index: 8, kind: output, shape index: {}]  }
   0x1   :  { %s1360_s29 = smov 0  }
   0x2 LB: > { %s30_s30 = sadd.s32 1, %s1302_s28  ;;  %p1139_p0 = scmp.ge.s32.totalorder %s1306_s29, 1  ;;  %s1306_s29 = sphi %s1360_s29, %s18_s29   ;;  %s1302_s28 = sphi %s1358_s28, %s1526_s28   ;;  %s1298_s27 = sphi %s1356_s27, %s1525_s27  }
   0x3   : > { %p32_p1 = scmp.ge.s32.totalorder %s30_s30, 2  ;;  %p297_p2 = scmp.lt.s32.totalorder %s1306_s29, 3 }
   0x5   : > { %s1528_s30 = smov (%p32_p1, %s30_s30), 0  ;;  %p298_p3 = pnand %p1139_p0, %p297_p2 }
   0x6   : > { %p342_p4 = scmp.lt.s32.totalorder (!%p298_p3), %s1298_s27, 1  ;;  %vm404_vm0 = vcmask (!%p298_p3), 261120   ;;  %v1266_v0 = vld [vmem:[%s1519_s3] sm:$0xff] (!%p298_p3)   ;;  %v1308_v2 = vmov (!%p298_p3), 0   ;;  %v372_v4 = vld [vmem:[%s1522_s6 + $0x10] sm:$0xff] (!%p298_p3)  ;;  %v371_v6 = vld [vmem:[%s1522_s6 + $0x8] sm:$0xff] (!%p298_p3)  ;;  %v691_v50 = vlaneseq (!%p298_p3) }
   0x7   : > { %301 = sbr.rel (%p298_p3) target bundleno = 1785 (0x6f9), region = 52  ;;  %v1267_v1 = vld [vmem:[%s1520_s4] sm:$0xff] (!%p298_p3)   ;;  %1264 = vset.pattern.permute.xlu0 (!%p298_p3), %v1308_v2  ;;  %1265 = vset.pattern.permute.xlu1 (!%p298_p3), %v1308_v2  ;;  %v373_v9 = vld [vmem:[%s1522_s6 + $0x18] sm:$0xff] (!%p298_p3)  ;;  %v1268_v12 = vld [vmem:[%s1519_s3 + $0x8] sm:$0xff] (!%p298_p3)   ;;  %v1309_v17 = vmov (!%p298_p3), 0.0   ;;  %vm1310_vm1 = vmmov (!%p298_p3), 0  }
   0x8   : > { %1189 = vmatprep.mubr.msk.bf16.mxu0 (!%p298_p3), %vm404_vm0, %v1266_v0  ;;  %1195 = vmatprep.mubr.msk.bf16.mxu1 (!%p298_p3), %vm404_vm0, %v1267_v1  ;;  %v370_v3 = vld [vmem:[%s1522_s6] sm:$0xff] (!%p298_p3)  ;;  %v472_v13 = vld [vmem:[%s1522_s6 + $0x28] sm:$0xff] (!%p298_p3)  ;;  %v473_v15 = vld [vmem:[%s1522_s6 + $0x30] sm:$0xff] (!%p298_p3)  ;;  %vm704_vm2 = vcmask (!%p298_p3), 130048   ;;  %v692_v51 = vshrl.u32 (!%p298_p3), %v691_v50, 7  ;;  %v696_v52 = vand.u32 (!%p298_p3), 127, %v691_v50 }
   0x9   : > { %376 = vperm.xlu0 (!%p298_p3), %1264, %v370_v3   ;;  %386 = vperm.xlu1 (!%p298_p3), %1265, %v372_v4   ;;  %v471_v11 = vld [vmem:[%s1522_s6 + $0x20] sm:$0xff] (!%p298_p3)  ;;  %v1269_v14 = vld [vmem:[%s1520_s4 + $0x8] sm:$0xff] (!%p298_p3)   ;;  %v474_v16 = vld [vmem:[%s1522_s6 + $0x38] sm:$0xff] (!%p298_p3)  ;;  %vm791_vm4 = vcmask (!%p298_p3), 64512   ;;  %vm1038_vm5 = vcmask (!%p298_p3), 257024  }
   0xa   : > { %v1270_v44 = vld [vmem:[%s1520_s4 + $0x10] sm:$0xff] (!%p298_p3)   ;;  %v1271_v45 = vld [vmem:[%s1520_s4 + $0x18] sm:$0xff] (!%p298_p3)   ;;  %vm697_vm3 = vcmp.gt.s32.totalorder (!%p298_p3), %v696_v52, %v692_v51  ;;  %v475_v4 = vld [vmem:[%s1522_s6 + $0x40] sm:$0xff] (!%p298_p3) }
   0xb   : > { %v698_v54 = vsel (!%p298_p3), %vm697_vm3, -1e+30, %v1309_v17 }
   0xd   : > { %381 = vperm.xlu0 (!%p298_p3), %1264, %v371_v6   ;;  %391 = vperm.xlu1 (!%p298_p3), %1265, %v373_v9   ;;  %v478_v9 = vld [vmem:[%s1522_s6 + $0x58] sm:$0xff] (!%p298_p3) }
   0xe   : > { %s1530_s27 = smov (!%p342_p4, %s1298_s27), 1 }
   0xf   : > { %s1384_s13 = sshll.u32 %s1530_s27, 2  ;;  %s355_s11 = scalar_lea.vmem %s1518_s2, %s1530_s27 }
  0x10   : > { %s348_s20 = scalar_lea.vmem %s1516_s0, %s1384_s13  ;;  %s352_s23 = scalar_lea.vmem %s1517_s1, %s1384_s13  ;;  %v1155_v53 = vld [vmem:[%s355_s11] ss:$0 sm:$0xff] }
  0x11   : > { %v1397_v5 = vld [vmem:[%s348_s20] sm:$0xf]  ;;  %481 = vperm.xlu0 %1264, %v471_v11   ;;  %486 = vperm.xlu1 %1265, %v472_v13   ;;  %v699_v55 = vadd.f32 %v1155_v53, %v698_v54  ;;  %s362_s14 = scalar_lea.vmem %s1524_s8, %s1384_s13 }
  0x12   : > { %1235 = vmatprep.subr.msk.bf16.mxu0 %vm404_vm0, %v1397_v5  ;;  %v365_v7 = vld [vmem:[%s352_s23] sm:$0xf]  ;;  %v412_v8 = vsel %vm404_vm0, %v1397_v5, 0 }
  0x13   : > { %1236 = vmatprep.subr.msk.bf16.mxu1 %vm404_vm0, %v365_v7  ;;  %1188 = vmatpush3.bf16.xpose.msra.mxu0 %v412_v8  ;;  %v552_v10 = vsel %vm404_vm0, %v365_v7, 0  ;;  %v477_v7 = vld [vmem:[%s1522_s6 + $0x50] sm:$0xff] }
  0x14   : > { %1194 = vmatpush3.bf16.xpose.msra.mxu1 %v552_v10  ;;  %1203 = vmatprep.subr.bf16.mxu0 %v1309_v17 }
  0x15   : > { %491 = vperm.xlu0 %1264, %v473_v15   ;;  %496 = vperm.xlu1 %1265, %v474_v16  }
  0x16   : > { %1215 = vmatprep.subr.bf16.mxu1 %v1309_v17 }
  0x1a   : > { %1190 = vmatmul.mubr.msk.bf16.vlgmr.msra.gmra.mrb[0].mxu0 %vm404_vm0, %v1268_v12 }
  0x1b   : > { %1196 = vmatmul.mubr.msk.bf16.vlgmr.msra.gmra.mrb[0].mxu1 %vm404_vm0, %v1269_v14  ;;  %1205 = vmatprep.mubr.msk.bf16.mxu0 %vm1310_vm1, %v1309_v17 }
  0x1c   : > { %1199 = vmatprep.mubr.msk.bf16.mxu1 %vm404_vm0, %v1270_v44  ;;  %v1272_v44 = vld [vmem:[%s1521_s5] sm:$0xff]  }
  0x23   : > { %1200 = vmatmul.mubr.msk.bf16.gmra.mrb[4].mxu1 %vm404_vm0, %v1271_v45  ;;  %v1273_v45 = vld [vmem:[%s1521_s5 + $0x8] sm:$0xff]  }
  0x24   : > { %1217 = vmatprep.mubr.msk.bf16.mxu1 %vm1310_vm1, %v1309_v17 }
  0x88   : > { %v377_v18 = vpop.permute.xlu0 %376  ;;  %v387_v19 = vpop.permute.xlu1 %386 }
  0x8c   : > { %v382_v20 = vpop.permute.xlu0 %381  ;;  %v392_v21 = vpop.permute.xlu1 %391 }
  0x90   : > { %v482_v22 = vpop.permute.xlu0 %481  ;;  %v487_v23 = vpop.permute.xlu1 %486 }
  0x94   : > { %v492_v24 = vpop.permute.xlu0 %491  ;;  %v497_v26 = vpop.permute.xlu1 %496 }
  0xed   : > { %v1191_v25 = vpop.f32.mrb[0].mxu0 }
  0xee   : > { %v457_v27 = vadd.f32 %v1191_v25, %v387_v19  ;;  %v1197_v28 = vpop.f32.mrb[0].mxu1  ;;  %v448_v29 = vpop.f32.mrb[1].mxu0 }
  0xef   : > { %v597_v30 = vadd.f32 %v1197_v28, %v492_v24  ;;  %v449_v31 = vadd.f32 %v448_v29, %v377_v18  ;;  %v588_v32 = vpop.f32.mrb[1].mxu1  ;;  %v1192_v33 = vpop.f32.mrb[2].mxu0  ;;  %v476_v29 = vld [vmem:[%s1522_s6 + $0x48] sm:$0xff] }
  0xf0   : > { %v1198_v34 = vpop.f32.mrb[2].mxu1  ;;  %651 = vxpose.xlu1.b32.start [1/2] (short) (narrow) %v457_v27, 8  ;;  %v451_v35 = vpop.f32.mrb[3].mxu0  ;;  %v589_v38 = vadd.f32 %v588_v32, %v482_v22  ;;  %v460_v39 = vadd.f32 %v1192_v33, %v392_v21 }
  0xf1   : > { %v600_v36 = vadd.f32 %v1198_v34, %v497_v26  ;;  %v591_v37 = vpop.f32.mrb[3].mxu1  ;;  %619 = vxpose.xlu0.b32.start [1/2] (short) (narrow) %v449_v31, 8  ;;  %v452_v42 = vadd.f32 %v451_v35, %v382_v20 }
  0xf2   : > { %v592_v40 = vadd.f32 %v591_v37, %v487_v23 }
  0xf3   : > { %v703_v41 = vpack.c.bf16 %v600_v36, %v597_v30 }
  0xf4   : > { %v702_v43 = vpack.c.bf16 %v592_v40, %v589_v38  ;;  %652 = vxpose.xlu1.b32.end [2/2] (short) (narrow) %v460_v39, 8 }
  0xf5   : > { %620 = vxpose.xlu0.b32.end [2/2] (short) (narrow) %v452_v42, 8 }
  0xf6   : > { %1204 = vmatpush3.bf16.msra.mxu0 %v702_v43  ;;  %v1201_v6 = vpop.f32.mrb[4].mxu1 }
  0xf7   : > { %1209 = vmatprep.subr.bf16.mxu0 %v1309_v17  ;;  %v604_v8 = vpop.f32.mrb[5].mxu1 }
  0xf8   : > { %v1202_v10 = vpop.f32.mrb[6].mxu1 }
  0xf9   : > { %v607_v28 = vpop.f32.mrb[7].mxu1 }
 0x170   : > { %v667_v48 = vpop.trf.xlu1 }
 0x171   : > { %v635_v46 = vpop.trf.xlu0  ;;  %v701_v49 = vpack.c.bf16 %v667_v48, %v667_v48 }
 0x172   : > { %v700_v47 = vpack.c.bf16 %v635_v46, %v635_v46 }
 0x174   : > { %1206 = vmatmul.mubr.msk.bf16.vlgmr.msra.gmra.mrb[4].mxu0 %vm704_vm2, %v700_v47 }
 0x175   : > { %1210 = vmatpush3.bf16.msra.mxu0 %v703_v41  ;;  %1211 = vmatprep.mubr.msk.bf16.mxu0 %vm1310_vm1, %v1309_v17 }
 0x176   : > { %1221 = vmatprep.subr.bf16.mxu0 %v1309_v17 }
 0x17c   : > { %1212 = vmatmul.mubr.msk.bf16.vlgmr.msra.gmra.mrb[8].mxu0 %vm704_vm2, %v701_v49 }
 0x17d   : > { %1223 = vmatprep.mubr.msk.bf16.mxu0 %vm1310_vm1, %v1309_v17 }
 0x247   : > { %v742_v56 = vpop.f32.mrb[4].mxu0 }
 0x248   : > { %v743_v57 = vadd.f32 %v742_v56, %v699_v55  ;;  %v1207_v58 = vpop.f32.mrb[5].mxu0  ;;  %v1009_v56 = vunpack.c.l.bf16 %v1397_v5 }
 0x249   : > { %v745_v59 = vpop.f32.mrb[6].mxu0 }
 0x24a   : > { %v1208_v60 = vpop.f32.mrb[7].mxu0  ;;  %v792_v61 = vsel %vm791_vm4, %v743_v57, -inf }
 0x24b   : > { %793 = vmax.xlane.f32.xlu0 %v792_v61 }
 0x24f   : > { %v785_v62 = vpop.f32.mrb[8].mxu0 }
 0x250   : > { %v786_v63 = vadd.f32 %v785_v62, %v699_v55  ;;  %v1213_v0 = vpop.f32.mrb[9].mxu0 }
 0x251   : > { %v788_v1 = vpop.f32.mrb[10].mxu0 }
 0x252   : > { %v795_v2 = vsel %vm791_vm4, %v786_v63, -inf  ;;  %v1214_v3 = vpop.f32.mrb[11].mxu0 }
 0x253   : > { %796 = vmax.xlane.f32.xlu1 %v795_v2 }
 0x264   : > { %501 = vperm.xlu1 %1265, %v475_v4  }
 0x268   : > { %511 = vperm.xlu1 %1265, %v477_v7  }
 0x26c   : > { %516 = vperm.xlu1 %1265, %v478_v9   ;;  %v1164_v9 = vld [vmem:[%s1523_s7 + $0x1] ss:$0 sm:$0xff] }
 0x2d8   : > { %v794_v11 = vpop.xlane.xlu0 %793 }
 0x2d9   : > { %v798_v12 = vsub.f32 %v743_v57, %v794_v11  ;;  %v1165_v11 = vld [vmem:[%s1523_s7 + $0x2] ss:$0 sm:$0xff] }
 0x2db   : > { %v800_v13 = vmul.f32 1.442695, %v798_v12 }
 0x2dd   : > { %1274 = vpow2.f32 %v800_v13 }
 0x2e0   : > { %v797_v14 = vpop.xlane.xlu1 %796 }
 0x2e1   : > { %v799_v15 = vsub.f32 %v786_v63, %v797_v14 }
 0x2e3   : > { %v802_v16 = vmul.f32 1.442695, %v799_v15 }
 0x2e4   : > { %v502_v18 = vpop.permute.xlu1 %501 }
 0x2e5   : > { %1276 = vpow2.f32 %v802_v16  ;;  %v605_v37 = vadd.f32 %v604_v8, %v502_v18 }
 0x2e7   : > { %v1275_v19 = vpop.eup %1274 }
 0x2e8   : > { %v512_v20 = vpop.permute.xlu1 %511  ;;  %v804_v21 = vsel %vm791_vm4, %v1275_v19, 0.0 }
 0x2e9   : > { %805 = vadd.xlane.f32.xlu0 %v804_v21  ;;  %v613_v23 = vadd.f32 %v1201_v6, %v512_v20 }
 0x2ec   : > { %v517_v22 = vpop.permute.xlu1 %516 }
 0x2ed   : > { %v616_v24 = vadd.f32 %v1202_v10, %v517_v22 }
 0x2ef   : > { %v1277_v25 = vpop.eup %1276  ;;  %v815_v26 = vpack.c.bf16 %v616_v24, %v613_v23 }
 0x2f0   : > { %v807_v27 = vsel %vm791_vm4, %v1277_v25, 0.0 }
 0x2f1   : > { %808 = vadd.xlane.f32.xlu0 %v807_v27 }
 0x307   : > { %506 = vperm.xlu0 %1264, %v476_v29  }
 0x376   : > { %v806_v30 = vpop.xlane.xlu0 %805 }
 0x377   : > { %1278 = vrcp.f32 %v806_v30 }
 0x37e   : > { %v809_v31 = vpop.xlane.xlu0 %808 }
 0x37f   : > { %1280 = vrcp.f32 %v809_v31 }
 0x381   : > { %v1279_v32 = vpop.eup %1278 }
 0x382   : > { %v812_v33 = vmul.f32 %v1279_v32, %v1275_v19 }
 0x384   : > { %v816_v34 = vpack.c.bf16 %v812_v33, %v812_v33 }
 0x386   : > { %v507_v35 = vpop.permute.xlu0 %506  ;;  %v822_v36 = vsel %vm791_vm4, %v816_v34, 0 }
 0x387   : > { %v608_v38 = vadd.f32 %v607_v28, %v507_v35  ;;  %1216 = vmatpush3.bf16.xpose.msra.mxu1 %v822_v36 }
 0x388   : > { %1227 = vmatprep.subr.bf16.mxu1 %v1309_v17 }
 0x389   : > { %v1281_v39 = vpop.eup %1280  ;;  %v814_v40 = vpack.c.bf16 %v608_v38, %v605_v37 }
 0x38a   : > { %v813_v41 = vmul.f32 %v1281_v39, %v1277_v25 }
 0x38c   : > { %v817_v42 = vpack.c.bf16 %v813_v41, %v813_v41 }
 0x38e   : > { %1218 = vmatmul.mubr.msk.bf16.vlgmr.msra.gmra.mrb[8].mxu1 %vm791_vm4, %v814_v40  ;;  %v869_v43 = vsel %vm791_vm4, %v817_v42, 0 }
 0x38f   : > { %1222 = vmatpush3.bf16.xpose.msra.mxu0 %v869_v43  ;;  %1231 = vmatprep.mubr.msk.bf16.mxu1 %vm1310_vm1, %v1309_v17 }
 0x390   : > { %1228 = vmatpush3.bf16.msra.mxu1 %v1272_v44 }
 0x391   : > { %1229 = vmatprep.subr.bf16.mxu1 %v1309_v17  ;;  %v1160_v17 = vld [vmem:[%s1523_s7] ss:$0 sm:$0xff] }
 0x394   : > { %1230 = vmatpush3.bf16.msra.mxu1 %v1273_v45 }
 0x396   : > { %1224 = vmatmul.mubr.msk.bf16.vlgmr.msra.gmra.mrb[12].mxu0 %vm791_vm4, %v815_v26 }
 0x461   : > { %v858_v46 = vpop.f32.mrb[8].mxu1 }
 0x462   : > { %912 = vxpose.xlu0.b32.start [1/4] (short) (narrow) %v858_v46, 8  ;;  %v1219_v47 = vpop.f32.mrb[9].mxu1 }
 0x463   : > { %v861_v48 = vpop.f32.mrb[10].mxu1 }
 0x464   : > { %v1220_v49 = vpop.f32.mrb[11].mxu1 }
 0x466   : > { %913 = vxpose.xlu0.b32.cont [2/4] (short) (narrow) %v861_v48, 8 }
 0x469   : > { %v905_v50 = vpop.f32.mrb[12].mxu0 }
 0x46a   : > { %914 = vxpose.xlu0.b32.cont [3/4] (short) (narrow) %v905_v50, 8  ;;  %v1225_v51 = vpop.f32.mrb[13].mxu0 }
 0x46b   : > { %v908_v52 = vpop.f32.mrb[14].mxu0 }
 0x46c   : > { %v1226_v53 = vpop.f32.mrb[15].mxu0 }
 0x46e   : > { %915 = vxpose.xlu0.b32.end [4/4] (short) (narrow) %v908_v52, 8 }
 0x4e2   : > { %v928_v54 = vpop.trf.xlu0 }
 0x4e3   : > { %v944_v55 = vpack.c.bf16 %v928_v54, %v928_v54 }
 0x4e5   : > { %1232 = vmatmul.mubr.msk.bf16.vlgmr.msra.gmra.mrb[12].mxu1 %vm404_vm0, %v944_v55 }
 0x5b8   : > { %v1003_v57 = vpop.f32.mrb[12].mxu1 }
 0x5b9   : > { %v1004_v58 = vadd.f32 %v1160_v17, %v1003_v57  ;;  %v1233_v59 = vpop.f32.mrb[13].mxu1 }
 0x5ba   : > { %v1006_v60 = vpop.f32.mrb[14].mxu1 }
 0x5bb   : > { %v1010_v61 = vadd.f32 %v1009_v56, %v1004_v58  ;;  %v1234_v62 = vpop.f32.mrb[15].mxu1 }
 0x5bd   : > { %v1011_v63 = vsel %vm404_vm0, %v1010_v61, 0.0 }
 0x5be   : > { %1012 = vadd.xlane.f32.xlu1 %v1011_v63 }
 0x64b   : > { %v1013_v0 = vpop.xlane.xlu1 %1012 }
 0x64c   : > { %v1015_v1 = vmul.f32 0.03125, %v1013_v0 }
 0x64e   : > { %v1016_v2 = vsub.f32 %v1010_v61, %v1015_v1 }
 0x650   : > { %v1017_v3 = vmul.f32 %v1016_v2, %v1016_v2 }
 0x652   : > { %v1018_v4 = vsel %vm404_vm0, %v1017_v3, 0.0 }
 0x653   : > { %1019 = vadd.xlane.f32.xlu1 %v1018_v4 }
 0x6e0   : > { %v1020_v6 = vpop.xlane.xlu1 %1019 }
 0x6e1   : > { %v1021_v7 = vmul.f32 0.03125, %v1020_v6 }
 0x6e3   : > { %v1022_v5 = vadd.f32 1e-05, %v1021_v7 }
 0x6e5   : > { %1282 = vrsqrt.f32 %v1022_v5 }
 0x6ef   : > { %v1283_v8 = vpop.eup %1282 }
 0x6f0   : > { %v1024_v10 = vmul.f32 %v1283_v8, %v1016_v2 }
 0x6f2   : > { %v1030_v12 = vmul.f32 %v1164_v9, %v1024_v10 }
 0x6f4   : > { %v1036_v13 = vadd.f32 %v1165_v11, %v1030_v12 }
 0x6f6   : > { %v1037_v14 = vpack.c.bf16 %v1036_v13, %v1036_v13 }
 0x6f8   : > { %1039 = vst.msk [vmem:[%s362_s14] sm:$0xf] %vm1038_vm5, %v1037_v14 }
 0x6f9 PF: > { %s18_s29 = sadd.s32 1, %s1306_s29   ;;  %s1525_s27 = smov %s1302_s28 }
 0x6fa   : > { %p15_p5 = scmp.ge.s32.totalorder %s18_s29, 4   ;;  %s1526_s28 = smov %s1528_s30 }
 0x6fc   :  { %17 = sbr.rel (!%p15_p5) target bundleno = 2 (0x2), region = 88 }

// kernel: forward.11
= control target key start
LH: loop header
LB: loop body
LE: loop exit
PB: predicated region body
PF: predicated region fallthrough
CT: control target
= control target key end

     0   :  { %s1346_s27 = smov 0   ;;  %s1348_s28 = smov 0   ;;  %s1505_s0 = inlined_call_operand.vmem [shape: bf16[2,8,32], index: 0, kind: input, shape index: {}, may-alias: {0,1}]   ;;  %s1506_s1 = inlined_call_operand.vmem [shape: bf16[2,8,32], index: 1, kind: input, shape index: {}, may-alias: {0,1}]   ;;  %s1507_s2 = inlined_call_operand.vmem [shape: f32[2,1,8], index: 2, kind: input, shape index: {}]   ;;  %s1508_s3 = inlined_call_operand.vmem [shape: bf16[32,32], index: 3, kind: input, shape index: {}]   ;;  %s1509_s4 = inlined_call_operand.vmem [shape: bf16[64,32], index: 4, kind: input, shape index: {}]   ;;  %s1510_s5 = inlined_call_operand.vmem [shape: bf16[32,32], index: 5, kind: input, shape index: {}]   ;;  %s1511_s6 = inlined_call_operand.vmem [shape: f32[96,1], index: 6, kind: input, shape index: {}]   ;;  %s1512_s7 = inlined_call_operand.vmem [shape: f32[3,32], index: 7, kind: input, shape index: {}]   ;;  %s1513_s8 = inlined_call_operand.vmem [shape: bf16[2,8,32], index: 8, kind: output, shape index: {}]  }
   0x1   :  { %s1350_s29 = smov 0  }
   0x2 LB: > { %s30_s30 = sadd.s32 1, %s1292_s28  ;;  %p1129_p0 = scmp.ge.s32.totalorder %s1296_s29, 1  ;;  %s1296_s29 = sphi %s1350_s29, %s18_s29   ;;  %s1292_s28 = sphi %s1348_s28, %s1515_s28   ;;  %s1288_s27 = sphi %s1346_s27, %s1514_s27  }
   0x3   : > { %p32_p1 = scmp.ge.s32.totalorder %s30_s30, 2  ;;  %p297_p2 = scmp.lt.s32.totalorder %s1296_s29, 3 }
   0x5   : > { %s1517_s30 = smov (%p32_p1, %s30_s30), 0  ;;  %p298_p3 = pnand %p1129_p0, %p297_p2 }
   0x6   : > { %p342_p4 = scmp.lt.s32.totalorder (!%p298_p3), %s1288_s27, 1  ;;  %vm404_vm0 = vcmask (!%p298_p3), 261120   ;;  %v1256_v0 = vld [vmem:[%s1508_s3] sm:$0xff] (!%p298_p3)   ;;  %v1298_v2 = vmov (!%p298_p3), 0   ;;  %v372_v4 = vld [vmem:[%s1511_s6 + $0x10] sm:$0xff] (!%p298_p3)  ;;  %v371_v6 = vld [vmem:[%s1511_s6 + $0x8] sm:$0xff] (!%p298_p3) }
   0x7   : > { %301 = sbr.rel (%p298_p3) target bundleno = 1785 (0x6f9), region = 52  ;;  %v1257_v1 = vld [vmem:[%s1509_s4] sm:$0xff] (!%p298_p3)   ;;  %1254 = vset.pattern.permute.xlu0 (!%p298_p3), %v1298_v2  ;;  %1255 = vset.pattern.permute.xlu1 (!%p298_p3), %v1298_v2  ;;  %v373_v9 = vld [vmem:[%s1511_s6 + $0x18] sm:$0xff] (!%p298_p3)  ;;  %v1258_v12 = vld [vmem:[%s1508_s3 + $0x8] sm:$0xff] (!%p298_p3)   ;;  %v1299_v17 = vmov (!%p298_p3), 0.0   ;;  %vm1300_vm1 = vmmov (!%p298_p3), 0  }
   0x8   : > { %1179 = vmatprep.mubr.msk.bf16.mxu0 (!%p298_p3), %vm404_vm0, %v1256_v0  ;;  %1185 = vmatprep.mubr.msk.bf16.mxu1 (!%p298_p3), %vm404_vm0, %v1257_v1  ;;  %v370_v3 = vld [vmem:[%s1511_s6] sm:$0xff] (!%p298_p3)  ;;  %v472_v13 = vld [vmem:[%s1511_s6 + $0x28] sm:$0xff] (!%p298_p3)  ;;  %v473_v15 = vld [vmem:[%s1511_s6 + $0x30] sm:$0xff] (!%p298_p3)  ;;  %vm694_vm2 = vcmask (!%p298_p3), 130048   ;;  %vm781_vm3 = vcmask (!%p298_p3), 64512   ;;  %vm1028_vm4 = vcmask (!%p298_p3), 257024  }
   0x9   : > { %376 = vperm.xlu0 (!%p298_p3), %1254, %v370_v3   ;;  %386 = vperm.xlu1 (!%p298_p3), %1255, %v372_v4   ;;  %v471_v11 = vld [vmem:[%s1511_s6 + $0x20] sm:$0xff] (!%p298_p3)  ;;  %v1259_v14 = vld [vmem:[%s1509_s4 + $0x8] sm:$0xff] (!%p298_p3)   ;;  %v474_v16 = vld [vmem:[%s1511_s6 + $0x38] sm:$0xff] (!%p298_p3) }
   0xa   : > { %v1260_v44 = vld [vmem:[%s1509_s4 + $0x10] sm:$0xff] (!%p298_p3)   ;;  %v1261_v45 = vld [vmem:[%s1509_s4 + $0x18] sm:$0xff] (!%p298_p3)   ;;  %v475_v63 = vld [vmem:[%s1511_s6 + $0x40] sm:$0xff] (!%p298_p3) }
   0xb   : > { %v477_v1 = vld [vmem:[%s1511_s6 + $0x50] sm:$0xff] (!%p298_p3)  ;;  %v478_v3 = vld [vmem:[%s1511_s6 + $0x58] sm:$0xff] (!%p298_p3) }
   0xd   : > { %381 = vperm.xlu0 (!%p298_p3), %1254, %v371_v6   ;;  %391 = vperm.xlu1 (!%p298_p3), %1255, %v373_v9  }
   0xe   : > { %s1519_s27 = smov (!%p342_p4, %s1288_s27), 1 }
   0xf   : > { %s1374_s13 = sshll.u32 %s1519_s27, 2  ;;  %s355_s11 = scalar_lea.vmem %s1507_s2, %s1519_s27 }
  0x10   : > { %s348_s20 = scalar_lea.vmem %s1505_s0, %s1374_s13  ;;  %s352_s23 = scalar_lea.vmem %s1506_s1, %s1374_s13  ;;  %v1145_v50 = vld [vmem:[%s355_s11] ss:$0 sm:$0xff] }
  0x11   : > { %v1387_v5 = vld [vmem:[%s348_s20] sm:$0xf]  ;;  %481 = vperm.xlu0 %1254, %v471_v11   ;;  %486 = vperm.xlu1 %1255, %v472_v13   ;;  %s362_s14 = scalar_lea.vmem %s1513_s8, %s1374_s13 }
  0x12   : > { %1225 = vmatprep.subr.msk.bf16.mxu0 %vm404_vm0, %v1387_v5  ;;  %v365_v7 = vld [vmem:[%s352_s23] sm:$0xf]  ;;  %v412_v8 = vsel %vm404_vm0, %v1387_v5, 0 }
  0x13   : > { %1226 = vmatprep.subr.msk.bf16.mxu1 %vm404_vm0, %v365_v7  ;;  %1178 = vmatpush3.bf16.xpose.msra.mxu0 %v412_v8  ;;  %v552_v10 = vsel %vm404_vm0, %v365_v7, 0 }
  0x14   : > { %1184 = vmatpush3.bf16.xpose.msra.mxu1 %v552_v10  ;;  %1193 = vmatprep.subr.bf16.mxu0 %v1299_v17 }
  0x15   : > { %491 = vperm.xlu0 %1254, %v473_v15   ;;  %496 = vperm.xlu1 %1255, %v474_v16  }
  0x16   : > { %1205 = vmatprep.subr.bf16.mxu1 %v1299_v17 }
  0x1a   : > { %1180 = vmatmul.mubr.msk.bf16.vlgmr.msra.gmra.mrb[0].mxu0 %vm404_vm0, %v1258_v12 }
  0x1b   : > { %1186 = vmatmul.mubr.msk.bf16.vlgmr.msra.gmra.mrb[0].mxu1 %vm404_vm0, %v1259_v14  ;;  %1195 = vmatprep.mubr.msk.bf16.mxu0 %vm1300_vm1, %v1299_v17 }
  0x1c   : > { %1189 = vmatprep.mubr.msk.bf16.mxu1 %vm404_vm0, %v1260_v44 }
  0x23   : > { %1190 = vmatmul.mubr.msk.bf16.gmra.mrb[4].mxu1 %vm404_vm0, %v1261_v45 }
  0x24   : > { %1207 = vmatprep.mubr.msk.bf16.mxu1 %vm1300_vm1, %v1299_v17 }
  0x88   : > { %v377_v18 = vpop.permute.xlu0 %376  ;;  %v387_v19 = vpop.permute.xlu1 %386 }
  0x8c   : > { %v382_v20 = vpop.permute.xlu0 %381  ;;  %v392_v21 = vpop.permute.xlu1 %391 }
  0x90   : > { %v482_v22 = vpop.permute.xlu0 %481  ;;  %v487_v23 = vpop.permute.xlu1 %486 }
  0x94   : > { %v492_v24 = vpop.permute.xlu0 %491  ;;  %v497_v26 = vpop.permute.xlu1 %496 }
  0xed   : > { %v1181_v25 = vpop.f32.mrb[0].mxu0 }
  0xee   : > { %v457_v27 = vadd.f32 %v1181_v25, %v387_v19  ;;  %v1187_v28 = vpop.f32.mrb[0].mxu1  ;;  %v448_v29 = vpop.f32.mrb[1].mxu0 }
  0xef   : > { %v597_v30 = vadd.f32 %v1187_v28, %v492_v24  ;;  %v449_v31 = vadd.f32 %v448_v29, %v377_v18  ;;  %v588_v32 = vpop.f32.mrb[1].mxu1  ;;  %v1182_v33 = vpop.f32.mrb[2].mxu0  ;;  %v476_v24 = vld [vmem:[%s1511_s6 + $0x48] sm:$0xff] }
  0xf0   : > { %v1188_v34 = vpop.f32.mrb[2].mxu1  ;;  %651 = vxpose.xlu1.b32.start [1/2] (short) (narrow) %v457_v27, 8  ;;  %v451_v35 = vpop.f32.mrb[3].mxu0  ;;  %v589_v38 = vadd.f32 %v588_v32, %v482_v22  ;;  %v460_v39 = vadd.f32 %v1182_v33, %v392_v21 }
  0xf1   : > { %v600_v36 = vadd.f32 %v1188_v34, %v497_v26  ;;  %v591_v37 = vpop.f32.mrb[3].mxu1  ;;  %619 = vxpose.xlu0.b32.start [1/2] (short) (narrow) %v449_v31, 8  ;;  %v452_v42 = vadd.f32 %v451_v35, %v382_v20 }
  0xf2   : > { %v592_v40 = vadd.f32 %v591_v37, %v487_v23 }
  0xf3   : > { %v687_v41 = vpack.c.bf16 %v600_v36, %v597_v30 }
  0xf4   : > { %v686_v43 = vpack.c.bf16 %v592_v40, %v589_v38  ;;  %652 = vxpose.xlu1.b32.end [2/2] (short) (narrow) %v460_v39, 8  ;;  %v1262_v39 = vld [vmem:[%s1510_s5] sm:$0xff]   ;;  %v1263_v40 = vld [vmem:[%s1510_s5 + $0x8] sm:$0xff]  }
  0xf5   : > { %620 = vxpose.xlu0.b32.end [2/2] (short) (narrow) %v452_v42, 8 }
  0xf6   : > { %1194 = vmatpush3.bf16.msra.mxu0 %v686_v43  ;;  %v1191_v0 = vpop.f32.mrb[4].mxu1 }
  0xf7   : > { %1199 = vmatprep.subr.bf16.mxu0 %v1299_v17  ;;  %v604_v2 = vpop.f32.mrb[5].mxu1 }
  0xf8   : > { %v1192_v4 = vpop.f32.mrb[6].mxu1 }
  0xf9   : > { %v607_v23 = vpop.f32.mrb[7].mxu1 }
 0x170   : > { %v667_v48 = vpop.trf.xlu1 }
 0x171   : > { %v635_v46 = vpop.trf.xlu0  ;;  %v685_v49 = vpack.c.bf16 %v667_v48, %v667_v48 }
 0x172   : > { %v684_v47 = vpack.c.bf16 %v635_v46, %v635_v46 }
 0x174   : > { %1196 = vmatmul.mubr.msk.bf16.vlgmr.msra.gmra.mrb[4].mxu0 %vm694_vm2, %v684_v47 }
 0x175   : > { %1200 = vmatpush3.bf16.msra.mxu0 %v687_v41  ;;  %1201 = vmatprep.mubr.msk.bf16.mxu0 %vm1300_vm1, %v1299_v17 }
 0x176   : > { %1211 = vmatprep.subr.bf16.mxu0 %v1299_v17 }
 0x17c   : > { %1202 = vmatmul.mubr.msk.bf16.vlgmr.msra.gmra.mrb[8].mxu0 %vm694_vm2, %v685_v49 }
 0x17d   : > { %1213 = vmatprep.mubr.msk.bf16.mxu0 %vm1300_vm1, %v1299_v17 }
 0x247   : > { %v732_v51 = vpop.f32.mrb[4].mxu0 }
 0x248   : > { %v733_v52 = vadd.f32 %v1145_v50, %v732_v51  ;;  %v1197_v53 = vpop.f32.mrb[5].mxu0  ;;  %v999_v51 = vunpack.c.l.bf16 %v1387_v5 }
 0x249   : > { %v735_v54 = vpop.f32.mrb[6].mxu0 }
 0x24a   : > { %v1198_v55 = vpop.f32.mrb[7].mxu0  ;;  %v782_v56 = vsel %vm781_vm3, %v733_v52, -inf }
 0x24b   : > { %783 = vmax.xlane.f32.xlu0 %v782_v56 }
 0x24f   : > { %v775_v57 = vpop.f32.mrb[8].mxu0 }
 0x250   : > { %v776_v58 = vadd.f32 %v1145_v50, %v775_v57  ;;  %v1203_v59 = vpop.f32.mrb[9].mxu0 }
 0x251   : > { %v778_v60 = vpop.f32.mrb[10].mxu0 }
 0x252   : > { %v785_v61 = vsel %vm781_vm3, %v776_v58, -inf  ;;  %v1204_v62 = vpop.f32.mrb[11].mxu0 }
 0x253   : > { %786 = vmax.xlane.f32.xlu1 %v785_v61 }
 0x264   : > { %501 = vperm.xlu1 %1255, %v475_v63  }
 0x268   : > { %511 = vperm.xlu1 %1255, %v477_v1  }
 0x26c   : > { %516 = vperm.xlu1 %1255, %v478_v3   ;;  %v1154_v3 = vld [vmem:[%s1512_s7 + $0x1] ss:$0 sm:$0xff] }
 0x2d8   : > { %v784_v6 = vpop.xlane.xlu0 %783 }
 0x2d9   : > { %v788_v7 = vsub.f32 %v733_v52, %v784_v6  ;;  %v1155_v6 = vld [vmem:[%s1512_s7 + $0x2] ss:$0 sm:$0xff] }
 0x2db   : > { %v790_v8 = vmul.f32 1.442695, %v788_v7 }
 0x2dd   : > { %1264 = vpow2.f32 %v790_v8 }
 0x2e0   : > { %v787_v9 = vpop.xlane.xlu1 %786 }
 0x2e1   : > { %v789_v10 = vsub.f32 %v776_v58, %v787_v9 }
 0x2e3   : > { %v792_v11 = vmul.f32 1.442695, %v789_v10 }
 0x2e4   : > { %v502_v12 = vpop.permute.xlu1 %501 }
 0x2e5   : > { %1266 = vpow2.f32 %v792_v11  ;;  %v605_v32 = vadd.f32 %v604_v2, %v502_v12 }
 0x2e7   : > { %v1265_v13 = vpop.eup %1264 }
 0x2e8   : > { %v512_v14 = vpop.permute.xlu1 %511  ;;  %v794_v15 = vsel %vm781_vm3, %v1265_v13, 0.0 }
 0x2e9   : > { %795 = vadd.xlane.f32.xlu0 %v794_v15  ;;  %v613_v18 = vadd.f32 %v1191_v0, %v512_v14 }
 0x2ec   : > { %v517_v16 = vpop.permute.xlu1 %516 }
 0x2ed   : > { %v616_v19 = vadd.f32 %v1192_v4, %v517_v16 }
 0x2ef   : > { %v1267_v20 = vpop.eup %1266  ;;  %v805_v21 = vpack.c.bf16 %v616_v19, %v613_v18 }
 0x2f0   : > { %v797_v22 = vsel %vm781_vm3, %v1267_v20, 0.0 }
 0x2f1   : > { %798 = vadd.xlane.f32.xlu0 %v797_v22 }
 0x307   : > { %506 = vperm.xlu0 %1254, %v476_v24  }
 0x376   : > { %v796_v25 = vpop.xlane.xlu0 %795 }
 0x377   : > { %1268 = vrcp.f32 %v796_v25 }
 0x37e   : > { %v799_v26 = vpop.xlane.xlu0 %798 }
 0x37f   : > { %1270 = vrcp.f32 %v799_v26 }
 0x381   : > { %v1269_v27 = vpop.eup %1268 }
 0x382   : > { %v802_v28 = vmul.f32 %v1269_v27, %v1265_v13 }
 0x384   : > { %v806_v29 = vpack.c.bf16 %v802_v28, %v802_v28 }
 0x386   : > { %v507_v30 = vpop.permute.xlu0 %506  ;;  %v812_v31 = vsel %vm781_vm3, %v806_v29, 0 }
 0x387   : > { %v608_v33 = vadd.f32 %v607_v23, %v507_v30  ;;  %1206 = vmatpush3.bf16.xpose.msra.mxu1 %v812_v31 }
 0x388   : > { %1217 = vmatprep.subr.bf16.mxu1 %v1299_v17 }
 0x389   : > { %v1271_v34 = vpop.eup %1270  ;;  %v804_v35 = vpack.c.bf16 %v608_v33, %v605_v32 }
 0x38a   : > { %v803_v36 = vmul.f32 %v1271_v34, %v1267_v20 }
 0x38c   : > { %v807_v37 = vpack.c.bf16 %v803_v36, %v803_v36 }
 0x38e   : > { %1208 = vmatmul.mubr.msk.bf16.vlgmr.msra.gmra.mrb[8].mxu1 %vm781_vm3, %v804_v35  ;;  %v859_v38 = vsel %vm781_vm3, %v807_v37, 0 }
 0x38f   : > { %1212 = vmatpush3.bf16.xpose.msra.mxu0 %v859_v38  ;;  %1221 = vmatprep.mubr.msk.bf16.mxu1 %vm1300_vm1, %v1299_v17 }
 0x390   : > { %1218 = vmatpush3.bf16.msra.mxu1 %v1262_v39 }
 0x391   : > { %1219 = vmatprep.subr.bf16.mxu1 %v1299_v17  ;;  %v1150_v17 = vld [vmem:[%s1512_s7] ss:$0 sm:$0xff] }
 0x394   : > { %1220 = vmatpush3.bf16.msra.mxu1 %v1263_v40 }
 0x396   : > { %1214 = vmatmul.mubr.msk.bf16.vlgmr.msra.gmra.mrb[12].mxu0 %vm781_vm3, %v805_v21 }
 0x461   : > { %v848_v41 = vpop.f32.mrb[8].mxu1 }
 0x462   : > { %902 = vxpose.xlu0.b32.start [1/4] (short) (narrow) %v848_v41, 8  ;;  %v1209_v42 = vpop.f32.mrb[9].mxu1 }
 0x463   : > { %v851_v43 = vpop.f32.mrb[10].mxu1 }
 0x464   : > { %v1210_v44 = vpop.f32.mrb[11].mxu1 }
 0x466   : > { %903 = vxpose.xlu0.b32.cont [2/4] (short) (narrow) %v851_v43, 8 }
 0x469   : > { %v895_v45 = vpop.f32.mrb[12].mxu0 }
 0x46a   : > { %904 = vxpose.xlu0.b32.cont [3/4] (short) (narrow) %v895_v45, 8  ;;  %v1215_v46 = vpop.f32.mrb[13].mxu0 }
 0x46b   : > { %v898_v47 = vpop.f32.mrb[14].mxu0 }
 0x46c   : > { %v1216_v48 = vpop.f32.mrb[15].mxu0 }
 0x46e   : > { %905 = vxpose.xlu0.b32.end [4/4] (short) (narrow) %v898_v47, 8 }
 0x4e2   : > { %v918_v49 = vpop.trf.xlu0 }
 0x4e3   : > { %v934_v50 = vpack.c.bf16 %v918_v49, %v918_v49 }
 0x4e5   : > { %1222 = vmatmul.mubr.msk.bf16.vlgmr.msra.gmra.mrb[12].mxu1 %vm404_vm0, %v934_v50 }
 0x5b8   : > { %v993_v52 = vpop.f32.mrb[12].mxu1 }
 0x5b9   : > { %v994_v53 = vadd.f32 %v1150_v17, %v993_v52  ;;  %v1223_v54 = vpop.f32.mrb[13].mxu1 }
 0x5ba   : > { %v996_v55 = vpop.f32.mrb[14].mxu1 }
 0x5bb   : > { %v1000_v56 = vadd.f32 %v999_v51, %v994_v53  ;;  %v1224_v57 = vpop.f32.mrb[15].mxu1 }
 0x5bd   : > { %v1001_v58 = vsel %vm404_vm0, %v1000_v56, 0.0 }
 0x5be   : > { %1002 = vadd.xlane.f32.xlu1 %v1001_v58 }
 0x64b   : > { %v1003_v59 = vpop.xlane.xlu1 %1002 }
 0x64c   : > { %v1005_v60 = vmul.f32 0.03125, %v1003_v59 }
 0x64e   : > { %v1006_v61 = vsub.f32 %v1000_v56, %v1005_v60 }
 0x650   : > { %v1007_v62 = vmul.f32 %v1006_v61, %v1006_v61 }
 0x652   : > { %v1008_v63 = vsel %vm404_vm0, %v1007_v62, 0.0 }
 0x653   : > { %1009 = vadd.xlane.f32.xlu1 %v1008_v63 }
 0x6e0   : > { %v1010_v0 = vpop.xlane.xlu1 %1009 }
 0x6e1   : > { %v1011_v1 = vmul.f32 0.03125, %v1010_v0 }
 0x6e3   : > { %v1012_v5 = vadd.f32 1e-05, %v1011_v1 }
 0x6e5   : > { %1272 = vrsqrt.f32 %v1012_v5 }
 0x6ef   : > { %v1273_v2 = vpop.eup %1272 }
 0x6f0   : > { %v1014_v4 = vmul.f32 %v1273_v2, %v1006_v61 }
 0x6f2   : > { %v1020_v7 = vmul.f32 %v1154_v3, %v1014_v4 }
 0x6f4   : > { %v1026_v8 = vadd.f32 %v1155_v6, %v1020_v7 }
 0x6f6   : > { %v1027_v9 = vpack.c.bf16 %v1026_v8, %v1026_v8 }
 0x6f8   : > { %1029 = vst.msk [vmem:[%s362_s14] sm:$0xf] %vm1028_vm4, %v1027_v9 }
 0x6f9 PF: > { %s18_s29 = sadd.s32 1, %s1296_s29   ;;  %s1514_s27 = smov %s1292_s28 }
 0x6fa   : > { %p15_p5 = scmp.ge.s32.totalorder %s18_s29, 4   ;;  %s1515_s28 = smov %s1517_s30 }
 0x6fc   :  { %17 = sbr.rel (!%p15_p5) target bundleno = 2 (0x2), region = 88 }

</bundles_post_ra>
